<compile_context>
chip_gen: v7x
topology: tpu7x:2x2x1
jax: 0.10.0
libtpu: 0.0.40
codegen_flags: <defaults>
</compile_context>

<pallas_src>
import jax
import jax.numpy as jnp
from jax.experimental import pallas as pl
from jax.experimental.pallas import tpu as pltpu

# ---- static problem sizes (the globals of the original script) ----
N_NODES = 16            # number of graph nodes
T_STEPS = 3             # time steps T
N_DIM   = 8             # feature dim n_dim
L10     = 8             # must equal n_dim
L11     = 8
DIM_HOP0 = L11
DIM_HOP1 = 2 * L11
M       = 16            # hidden units (== n_h_units)
BATCH   = 4
S1      = 4             # hop-1 fanout
S2      = 8             # hop-2 fanout
D2      = S2 // S1      # 2-hop neighbours per 1-hop neighbour

# ---- derived row layout of the single gathered matrix --------------------
TB   = T_STEPS * BATCH          # 12   rows per (t, b) group
STB  = S1 * TB                  # 48   rows per (s, t, b) group
R_XT = 0                        # xt rows      [0, TB)       row = t*B + b
R_T0 = TB                       # tgt0 rows    [TB, 2TB)
R_T1 = 2 * TB                   # tgt1 rows    [2TB, 2TB+STB) row = s*TB+t*B+b
R_FS = 2 * TB + STB             # fs1 rows     (j-major, then s, t, b)
R_TOT = 2 * TB + STB + D2 * STB  # 168

# ---- packed attention/projection slab (rows = N_DIM = L11 = 8) ------------
# column order MUST match the static slices inside the kernel.
C_UA1 = 0                       # tgt @ ua1            (1)
C_UB1 = 1                       # tgt @ ub1            (1)
C_A1  = 2                       # tgt @ a1             (DIM_HOP0)
C_V1  = C_A1 + DIM_HOP0         # tgt @ v1t            (L11)
C_WX  = C_V1 + L11              # xt -> GRU contrib    (W_PRE)
W_PRE = 2 * M + N_DIM + M       # 56 = [z(16) | r1(16) | r2(8) | h~(16)]
C_Q   = C_WX + W_PRE            # 74: hop @ [ua0 | ub0 | v0t]   (2 + L10)
C_B1  = C_Q + 2 + L10           # 84: fsw @ b1         (DIM_HOP0)
ATTN_COLS = C_B1 + DIM_HOP0     # 92

# ---- packed GRU slab (rows = M + N_DIM = 24, cols = 128) -------------------
W_HCAT   = 2 * M + N_DIM        # 40: h @ [Wz_h | Wr1_h | Wr2_h]
GC_WHH   = 56                   # [Wh_h ; Wh_n] at cols 56:72
GC_B     = 72                   # bias row at cols 72:128
GRU_ROWS = M + N_DIM            # 24
GRU_COLS = GC_B + W_PRE         # 128

_VMEM = pl.BlockSpec(memory_space=pltpu.MemorySpace.VMEM)


# ----------------------------------------------------------------------------
# Fused kernel: gathers + 3 attention levels + 2 hop embeddings for all T in
# one batched pass, then the (short) GRU recurrence.  ~10 matmuls total.
# ----------------------------------------------------------------------------
def _gru_neighbor_kernel(idx_ref, feats_ref, attn_ref, gru_ref,
                         h_out_ref, beta_out_ref):
  f32 = jnp.float32
  B, T, n, m = BATCH, T_STEPS, N_DIM, M

  def mm(a, b):
    return jnp.dot(a, b, preferred_element_type=f32)

  def leaky(x):                        # LeakyReLU(0.01)
    return jnp.where(x > 0, x, 0.01 * x)

  def softmax_cols(cols):
    # numerically-stable softmax across a static list of (rows, 1) columns
    mx = cols[0]
    for c in cols[1:]:
      mx = jnp.maximum(mx, c)
    es = [jnp.exp(c - mx) for c in cols]
    den = es[0]
    for e in es[1:]:
      den = den + e
    inv = 1.0 / den                    # exact: keeps the 1e-4 check safe
    return [e * inv for e in es]

  attn = attn_ref[...]                                    # (8, 92)
  gru = gru_ref[...]                                      # (24, 128)

  # ---- 1 matmul: every gather (xt, tgt0, tgt1, fs1; all T) at once ---------
  idx = idx_ref[...]                                      # (R_TOT, 1) int32
  cols = jax.lax.broadcasted_iota(jnp.int32, (R_TOT, T * N_NODES), 1)
  oh = jnp.where(idx == cols, jnp.float32(1.0), jnp.float32(0.0))
  g = mm(oh, feats_ref[...])                              # (R_TOT, n)

  # ---- 1 matmul: all scores / projections / GRU-x contributions at once ----
  gp = mm(g, attn)                                        # (R_TOT, 92)

  st1  = gp[R_T1:R_FS, C_UA1:C_UA1 + 1]                   # (STB, 1)
  ss0  = gp[R_T1:R_FS, C_UB1:C_UB1 + 1]                   # (STB, 1)
  t1a1 = gp[R_T1:R_FS, C_A1:C_A1 + DIM_HOP0]              # (STB, H0)
  t1v1 = gp[R_T1:R_FS, C_V1:C_V1 + L11]                   # (STB, L11)
  st0  = gp[R_T0:R_T1, C_UA1:C_UA1 + 1]                   # (TB, 1)
  t0a1 = gp[R_T0:R_T1, C_A1:C_A1 + DIM_HOP0]              # (TB, H0)
  pre_x = gp[R_XT:R_T0, C_WX:C_WX + W_PRE]                # (TB, 56)

  # ---- hop-1 attention: each (t, s, b) over its D2 2-hop neighbours --------
  sc1 = [leaky(st1 + gp[R_FS + j * STB:R_FS + (j + 1) * STB, C_UB1:C_UB1 + 1])
         for j in range(D2)]
  beta1 = softmax_cols(sc1)                               # D2 x (STB, 1)
  fs1v = [gp[R_FS + j * STB:R_FS + (j + 1) * STB, C_V1:C_V1 + L11]
          for j in range(D2)]
  fsw1_v = beta1[0] * fs1v[0]
  for j in range(1, D2):
    fsw1_v = fsw1_v + beta1[j] * fs1v[j]                  # (STB, L11)

  # ---- hop-0 attention: each (t, b) over its S1 1-hop neighbours -----------
  sc0 = [leaky(st0 + ss0[s * TB:(s + 1) * TB, :]) for s in range(S1)]
  beta0 = softmax_cols(sc0)
  fsw0_v = beta0[0] * t1v1[0:TB, :]
  for s in range(1, S1):
    fsw0_v = fsw0_v + beta0[s] * t1v1[s * TB:(s + 1) * TB, :]   # (TB, L11)

  # ---- hop embeddings: ONE matmul covers hop1 (48 rows) and hop0 (12 rows) -
  b1 = attn[:, C_B1:C_B1 + DIM_HOP0]                      # (L11, H0)
  fsw_all = jnp.concatenate([fsw1_v, fsw0_v], axis=0)     # (60, L11)
  ta1_all = jnp.concatenate([t1a1, t0a1], axis=0)         # (60, H0)
  hop_all = jax.nn.sigmoid(ta1_all + mm(fsw_all, b1))     # (60, H0)

  # ---- final attention: ONE matmul for ua0 / ub0 / v0t projections ---------
  hq = mm(hop_all, attn[:, C_Q:C_Q + 2 + L10])            # (60, 10)
  ssf  = hq[0:STB, 1:2]                                   # hop1 @ ub0
  h1v0 = hq[0:STB, 2:2 + L10]                             # hop1 @ v0t
  stf  = hq[STB:STB + TB, 0:1]                            # hop0 @ ua0
  scf = [leaky(stf + ssf[s * TB:(s + 1) * TB, :]) for s in range(S1)]
  betaf = softmax_cols(scf)
  xnt = betaf[0] * h1v0[0:TB, :]
  for s in range(1, S1):
    xnt = xnt + betaf[s] * h1v0[s * TB:(s + 1) * TB, :]   # (TB, L10)

  # ---- attention weights: one lane-dense (TB, S1*(1+D2)) store -------------
  beta_cols = []
  for s in range(S1):
    beta_cols.append(betaf[s])
    for j in range(D2):
      beta_cols.append(beta1[j][s * TB:(s + 1) * TB, :])
  beta_out_ref[...] = jnp.concatenate(beta_cols, axis=1)  # (TB, 12)

  # ---- GRU: non-recurrent contributions precomputed for all T --------------
  wn_pad = gru[M:GRU_ROWS, 0:W_PRE]                       # (n, 56) xnt contrib
  bias = gru[0:1, GC_B:GC_B + W_PRE]                      # (1, 56)
  pre = pre_x + mm(xnt, wn_pad) + bias                    # (TB, 56)

  w_hcat  = gru[0:M, 0:W_HCAT]                            # (M, 40)
  w_hh_hn = gru[0:GRU_ROWS, GC_WHH:GC_WHH + M]            # (24, M)
  wh_n    = gru[M:GRU_ROWS, GC_WHH:GC_WHH + M]            # (n, M)

  h_list = []
  h = None
  for t in range(T):                                      # T = 3, static unroll
    xnt_t = xnt[t * B:(t + 1) * B, :]
    p_z  = pre[t * B:(t + 1) * B, 0:m]
    p_r1 = pre[t * B:(t + 1) * B, m:2 * m]
    p_r2 = pre[t * B:(t + 1) * B, 2 * m:2 * m + n]
    p_h  = pre[t * B:(t + 1) * B, 2 * m + n:2 * m + n + m]
    if t == 0:                                            # h == 0, specialized
      rt2 = jax.nn.sigmoid(p_r2)
      h = jnp.tanh(p_h + mm(rt2 * xnt_t, wh_n))
    else:
      gh = mm(h, w_hcat)                                  # (B, 40)
      zt  = jax.nn.sigmoid(p_z + gh[:, 0:m])
      rt1 = jax.nn.sigmoid(p_r1 + gh[:, m:2 * m])
      rt2 = jax.nn.sigmoid(p_r2 + gh[:, 2 * m:2 * m + n])
      hin = jnp.concatenate([rt1 * h, rt2 * xnt_t], axis=1)     # (B, M + n)
      ht_tilde = jnp.tanh(p_h + mm(hin, w_hh_hn))
      h = (1.0 - zt) * h + zt * ht_tilde
    h_list.append(h)

  # one lane-dense (B, T*M) store; the wrapper reshape to (B, T, M) is free
  h_out_ref[...] = jnp.concatenate(h_list, axis=1)


# ----------------------------------------------------------------------------
# Wrapper: index packing, algebraic weight folding, ONE pallas_call.
# ----------------------------------------------------------------------------
def _prep_indices(saps_idx, x_idx):
  """One int32 (R_TOT, 1) column of node indices, pre-offset by t*N."""
  T, B, _ = saps_idx.shape
  t_off = (jnp.arange(T, dtype=jnp.int32) * N_NODES)[:, None]        # (T, 1)
  saps = saps_idx.astype(jnp.int32)
  xt_idx = jnp.broadcast_to(x_idx.astype(jnp.int32)[None, :], (T, B)) + t_off
  tgt0_idx = saps[:, :, 0] + t_off                                   # (T, B)
  h1_idx = jnp.transpose(saps[:, :, 1:1 + S1], (2, 0, 1)) + t_off[None]
  h2 = saps[:, :, 1 + S1:].reshape(T, B, S1, D2)
  h2_idx = jnp.transpose(h2, (3, 2, 0, 1)) + t_off[None, None]       # (D2,S1,T,B)
  all_idx = jnp.concatenate(
      [xt_idx.reshape(-1), tgt0_idx.reshape(-1),
       h1_idx.reshape(-1), h2_idx.reshape(-1)], axis=0)
  return all_idx.reshape(-1, 1)                                      # (R_TOT, 1)


def _prep_params(p):
  """Two packed f32 slabs; column/row order must match kernel constants."""
  f32 = jnp.float32
  nd = N_DIM
  ua1 = (p['sa1_V'].T @ p['sa1_w'][:L11]).reshape(nd, 1)
  ub1 = (p['sa1_V'].T @ p['sa1_w'][L11:]).reshape(nd, 1)
  ua0 = (p['sa0_V'].T @ p['sa0_w'][:L10]).reshape(L11, 1)
  ub0 = (p['sa0_V'].T @ p['sa0_w'][L10:]).reshape(L11, 1)
  v1t = p['aam_V1_h1'].T                                  # (n, L11)
  v0t = p['aam_V1_h0'].T                                  # (L11, L10)
  a1 = v1t @ p['aam_W_hops'][:, :L11].T                   # (n, DIM_HOP0)
  b1 = p['aam_W_hops'][:, L11:].T                         # (L11, DIM_HOP0)

  wz, wr1 = p['Wz'], p['Wr1']
  wz_h, wz_x, wz_n    = wz[:, :M].T,  wz[:, M:M + nd].T,  wz[:, M + nd:].T
  wr1_h, wr1_x, wr1_n = wr1[:, :M].T, wr1[:, M:M + nd].T, wr1[:, M + nd:].T
  wr2_h = p['Wr2_1'].T
  wr2_x, wr2_n = p['Wr2_2'][:, :nd].T, p['Wr2_2'][:, nd:].T
  wh_h = p['Wh_1'].T
  wh_x, wh_n = p['Wh_2'][:, :nd].T, p['Wh_2'][:, nd:].T

  # xt -> GRU pre-activation columns [z | r1 | r2 | h~]
  wx_gru = jnp.concatenate([wz_x, wr1_x, wr2_x, wh_x], axis=1)       # (n, 56)
  attn_slab = jnp.concatenate(
      [ua1, ub1, a1, v1t, wx_gru, ua0, ub0, v0t, b1], axis=1).astype(f32)
  assert attn_slab.shape == (N_DIM, ATTN_COLS)

  # xnt -> GRU pre-activation columns (no h~ term -> zeros)
  wn_pad = jnp.concatenate(
      [wz_n, wr1_n, wr2_n, jnp.zeros((nd, M), f32)], axis=1)         # (n, 56)
  w_hcat = jnp.concatenate([wz_h, wr1_h, wr2_h], axis=1)             # (M, 40)
  w_hh_hn = jnp.concatenate([wh_h, wh_n], axis=0)                    # (24, M)
  bias = jnp.concatenate(
      [p['bz'], p['br1'], p['br2'], p['bh']]).reshape(1, W_PRE)      # (1, 56)
  assert w_hcat.shape == (M, W_HCAT)
  assert wn_pad.shape == (N_DIM, W_PRE)
  assert w_hh_hn.shape == (GRU_ROWS, M)

  gru_slab = jnp.zeros((GRU_ROWS, GRU_COLS), f32)
  gru_slab = gru_slab.at[0:M, 0:W_HCAT].set(w_hcat.astype(f32))
  gru_slab = gru_slab.at[M:GRU_ROWS, 0:W_PRE].set(wn_pad.astype(f32))
  gru_slab = gru_slab.at[0:GRU_ROWS, GC_WHH:GC_WHH + M].set(w_hh_hn.astype(f32))
  gru_slab = gru_slab.at[0:1, GC_B:GC_B + W_PRE].set(bias.astype(f32))
  return attn_slab, gru_slab


def gru_neighbor_forward(p, features, saps_idx, x_idx):
  N, T, n = features.shape
  B = x_idx.shape[0]
  feats_flat = jnp.transpose(features, (1, 0, 2)).reshape(T * N, n)
  feats_flat = feats_flat.astype(jnp.float32)                  # row = t*N + node

  idx = _prep_indices(saps_idx, x_idx)
  attn_slab, gru_slab = _prep_params(p)

  h_out, beta_out = pl.pallas_call(
      _gru_neighbor_kernel,
      out_shape=(jax.ShapeDtypeStruct((B, T * M), jnp.float32),
                 jax.ShapeDtypeStruct((T * B, S1 * (1 + D2)), jnp.float32)),
      in_specs=[_VMEM, _VMEM, _VMEM, _VMEM],
      out_specs=(_VMEM, _VMEM),
      cost_estimate=pl.CostEstimate(flops=120_000, transcendentals=1_500,
                                    bytes_accessed=40_000),
  )(idx, feats_flat, attn_slab, gru_slab)

  # free (row-major) reshapes only -- no post-kernel transposes / concats
  h_tensor = h_out.reshape(B, T, M)
  Beta = beta_out.reshape(T, B, S1, 1 + D2)
  return h_tensor, Beta


# ----------------------------------------------------------------------------
# Pure-JAX reference (same math as the original torch module, in f32).
# ----------------------------------------------------------------------------
def _ref_attn_aggregate(fea_t, fea_s, v_att, w_att, v_agg):
  L = v_att.shape[0]
  wa = w_att[:L].reshape(1, 1, L)
  wb = w_att[L:].reshape(1, 1, L)
  pt = jnp.einsum('gdn,ln->gdl', fea_t, v_att)
  ps = jnp.einsum('gdn,ln->gdl', fea_s, v_att)
  score = (pt * wa).sum(-1) + (ps * wb).sum(-1)
  score = jnp.where(score > 0, score, 0.01 * score)
  beta = jax.nn.softmax(score, axis=1)
  agg = jnp.einsum('gd,gdl->gl', beta, jnp.einsum('gdn,ln->gdl', fea_s, v_agg))
  return beta, agg


def _ref_hop_embed(tgt, agg, v_agg, w_hops):
  return jax.nn.sigmoid(jnp.concatenate([tgt @ v_agg.T, agg], axis=1)
                        @ w_hops.T)


def _ref_aggregate_att_mean(p, x_feat, samples):
  n = x_feat.shape[1]
  d2 = S2 // S1
  B = samples.shape[0]
  samp_h2 = samples[:, -S2:].reshape(B, S1, d2)
  fea_s1 = x_feat[samp_h2]                                     # (B,S1,d2,n)
  samp_h1 = samples[:, -(S1 + S2):-S2]                         # (B,S1)
  tgt1 = x_feat[samp_h1]
  fea_t1 = jnp.broadcast_to(tgt1[:, :, None, :], (B, S1, d2, n))
  beta1, agg1 = _ref_attn_aggregate(fea_t1.reshape(B * S1, d2, n),
                                    fea_s1.reshape(B * S1, d2, n),
                                    p['sa1_V'], p['sa1_w'], p['aam_V1_h1'])
  beta_hop1 = beta1.reshape(B, S1, d2)
  hop1 = _ref_hop_embed(tgt1.reshape(B * S1, n), agg1,
                        p['aam_V1_h1'], p['aam_W_hops']).reshape(B, S1,
                                                                 DIM_HOP0)
  tgt0 = x_feat[samples[:, 0]]
  fea_t0 = jnp.broadcast_to(tgt0[:, None, :], (B, S1, n))
  _b0, agg0 = _ref_attn_aggregate(fea_t0, tgt1, p['sa1_V'], p['sa1_w'],
                                  p['aam_V1_h1'])
  hop0 = _ref_hop_embed(tgt0, agg0, p['aam_V1_h1'], p['aam_W_hops'])
  fea_tf = jnp.broadcast_to(hop0[:, None, :], (B, S1, DIM_HOP0))
  beta_f, agg_f = _ref_attn_aggregate(fea_tf, hop1, p['sa0_V'], p['sa0_w'],
                                      p['aam_V1_h0'])
  beta_step = jnp.concatenate([beta_f[:, :, None], beta_hop1], axis=2)
  return agg_f, beta_step


def gru_neighbor_forward_ref(p, features, saps_idx, x_idx):
  T = features.shape[1]
  B = x_idx.shape[0]
  X = features[x_idx]
  wzrT = jnp.concatenate(
      [p['Wz'], p['Wr1'],
       jnp.concatenate([p['Wr2_1'], p['Wr2_2']], axis=1)], axis=0).T
  bzr = jnp.concatenate([p['bz'], p['br1'], p['br2']]).reshape(1, -1)
  whT = jnp.concatenate([p['Wh_1'], p['Wh_2']], axis=1).T
  bh = p['bh'].reshape(1, -1)
  h = jnp.zeros((B, M), jnp.float32)
  h_list, betas = [], []
  for i in range(T):
    xt = X[:, i, :]
    xnt, beta_step = _ref_aggregate_att_mean(p, features[:, i, :], saps_idx[i])
    inp = jnp.concatenate([h, xt, xnt], axis=1)
    zr = jax.nn.sigmoid(inp @ wzrT + bzr)
    zt, rt1, rt2 = zr[:, :M], zr[:, M:2 * M], zr[:, 2 * M:2 * M + N_DIM]
    ht_tilde = jnp.tanh(
        jnp.concatenate([rt1 * h, xt, rt2 * xnt], axis=1) @ whT + bh)
    h = ht_tilde if i == 0 else (1.0 - zt) * h + zt * ht_tilde
    h_list.append(h)
    betas.append(beta_step)
  return jnp.stack(h_list, axis=1), jnp.stack(betas, axis=0)


# ----------------------------------------------------------------------------
# Deterministic parameter init (shapes from __init__; synthetic, no checkpoint).
# ----------------------------------------------------------------------------
def init_params(key):
  ks = jax.random.split(key, 17)

  def tn(k, shape, mean=-0.1, std=0.1):
    return (mean + std * jax.random.truncated_normal(
        k, -2.0, 2.0, shape, jnp.float32)).astype(jnp.float32)

  return {
      'Wz':    tn(ks[0], (M, M + 2 * N_DIM)),
      'Wr1':   tn(ks[1], (M, M + 2 * N_DIM)),
      'Wr2_1': tn(ks[2], (N_DIM, M)),
      'Wr2_2': tn(ks[3], (N_DIM, 2 * N_DIM)),
      'Wh_1':  tn(ks[4], (M, M)),
      'Wh_2':  tn(ks[5], (M, 2 * N_DIM)),
      'bz':    tn(ks[6], (M,), 0.0, 1.0),
      'br1':   tn(ks[7], (M,), 0.0, 1.0),
      'br2':   tn(ks[8], (N_DIM,), 0.0, 1.0),
      'bh':    tn(ks[9], (M,), 0.0, 1.0),
      'aam_V1_h0':  tn(ks[10], (L10, L11)),
      'aam_V1_h1':  tn(ks[11], (L11, N_DIM)),
      'aam_W_hops': tn(ks[12], (DIM_HOP0, DIM_HOP1)),
      'sa1_V': tn(ks[13], (L11, N_DIM)),
      'sa1_w': tn(ks[14], (2 * L11,)),
      'sa0_V': tn(ks[15], (L10, L11)),
      'sa0_w': tn(ks[16], (2 * L10,)),
  }


if __name__ == "__main__":
  key = jax.random.PRNGKey(0)
  kf, ki, kp = jax.random.split(key, 3)

  features = jax.random.normal(kf, (N_NODES, T_STEPS, N_DIM), jnp.float32)
  saps_idx = jax.random.randint(ki, (T_STEPS, BATCH, 1 + S1 + S2),
                                0, N_NODES, jnp.int32)
  x_idx = saps_idx[0, :, 0]            # target-node indices fed to forward()

  params = init_params(kp)

  fwd = jax.jit(gru_neighbor_forward)
  h_tensor, Beta = fwd(params, features, saps_idx, x_idx)
  h_tensor = jax.block_until_ready(h_tensor)
  Beta = jax.block_until_ready(Beta)

  h_ref, beta_ref = jax.jit(gru_neighbor_forward_ref)(params, features,
                                                      saps_idx, x_idx)
  h_ref = jax.block_until_ready(h_ref)
  beta_ref = jax.block_until_ready(beta_ref)

  assert h_tensor.shape == (BATCH, T_STEPS, M)
  assert Beta.shape == (T_STEPS, BATCH, S1, 1 + D2)
  assert jnp.allclose(h_tensor, h_ref, atol=1e-4, rtol=1e-4), "hidden mismatch"
  assert jnp.allclose(Beta, beta_ref, atol=1e-4, rtol=1e-4), "Beta mismatch"

  print("KERNEL_OK")
</pallas_src>

<mosaic_0001>
module attributes {stable_mosaic.version = 11 : i64} {
  func.func @_gru_neighbor_kernel(%arg0: memref<168x1xi32, #tpu.memory_space<vmem>>, %arg1: memref<48x8xf32, #tpu.memory_space<vmem>>, %arg2: memref<8x92xf32, #tpu.memory_space<vmem>>, %arg3: memref<24x128xf32, #tpu.memory_space<vmem>>, %arg4: memref<4x48xf32, #tpu.memory_space<vmem>>, %arg5: memref<12x12xf32, #tpu.memory_space<vmem>>) attributes {dimension_semantics = [], scalar_prefetch = 0 : i64, scratch_operands = 0 : i64, tpu.core_type = #tpu.core_type<tc>} {
    %c0 = arith.constant 0 : index
    %c0_0 = arith.constant 0 : index
    %0 = vector.load %arg2[%c0, %c0_0] : memref<8x92xf32, #tpu.memory_space<vmem>>, vector<8x92xf32>
    %c0_1 = arith.constant 0 : index
    %c0_2 = arith.constant 0 : index
    %1 = vector.load %arg3[%c0_1, %c0_2] : memref<24x128xf32, #tpu.memory_space<vmem>>, vector<24x128xf32>
    %c0_3 = arith.constant 0 : index
    %c0_4 = arith.constant 0 : index
    %2 = vector.load %arg0[%c0_3, %c0_4] : memref<168x1xi32, #tpu.memory_space<vmem>>, vector<168x1xi32>
    %3 = tpu.iota {dimensions = array<i32: 1>} : vector<168x48xi32>
    %4 = vector.broadcast %2 : vector<168x1xi32> to vector<168x48xi32>
    %5 = arith.cmpi eq, %4, %3 : vector<168x48xi32>
    %cst = arith.constant 1.000000e+00 : f32
    %cst_5 = arith.constant 0.000000e+00 : f32
    %6 = vector.broadcast %cst : f32 to vector<168x48xf32>
    %7 = vector.broadcast %cst_5 : f32 to vector<168x48xf32>
    %8 = arith.select %5, %6, %7 : vector<168x48xi1>, vector<168x48xf32>
    %c0_6 = arith.constant 0 : index
    %c0_7 = arith.constant 0 : index
    %9 = vector.load %arg1[%c0_6, %c0_7] : memref<48x8xf32, #tpu.memory_space<vmem>>, vector<48x8xf32>
    %cst_8 = arith.constant dense<0.000000e+00> : vector<168x8xf32>
    %10 = tpu.matmul %8, %9, %cst_8 {dimension_numbers = #tpu.dot_dimension_numbers<[1], [0], [0], [1], [0, 0, 1, 1], [], []>} : vector<168x48xf32>, vector<48x8xf32>, vector<168x8xf32> -> vector<168x8xf32>
    %cst_9 = arith.constant dense<0.000000e+00> : vector<168x92xf32>
    %11 = tpu.matmul %10, %0, %cst_9 {dimension_numbers = #tpu.dot_dimension_numbers<[1], [0], [0], [1], [0, 0, 1, 1], [], []>} : vector<168x8xf32>, vector<8x92xf32>, vector<168x92xf32> -> vector<168x92xf32>
    %12 = vector.extract_strided_slice %11 {offsets = [24, 0], sizes = [48, 1], strides = [1, 1]} : vector<168x92xf32> to vector<48x1xf32>
    %13 = vector.extract_strided_slice %11 {offsets = [24, 1], sizes = [48, 1], strides = [1, 1]} : vector<168x92xf32> to vector<48x1xf32>
    %14 = vector.extract_strided_slice %11 {offsets = [24, 2], sizes = [48, 8], strides = [1, 1]} : vector<168x92xf32> to vector<48x8xf32>
    %15 = vector.extract_strided_slice %11 {offsets = [24, 10], sizes = [48, 8], strides = [1, 1]} : vector<168x92xf32> to vector<48x8xf32>
    %16 = vector.extract_strided_slice %11 {offsets = [12, 0], sizes = [12, 1], strides = [1, 1]} : vector<168x92xf32> to vector<12x1xf32>
    %17 = vector.extract_strided_slice %11 {offsets = [12, 2], sizes = [12, 8], strides = [1, 1]} : vector<168x92xf32> to vector<12x8xf32>
    %18 = vector.extract_strided_slice %11 {offsets = [0, 18], sizes = [12, 56], strides = [1, 1]} : vector<168x92xf32> to vector<12x56xf32>
    %19 = vector.extract_strided_slice %11 {offsets = [72, 1], sizes = [48, 1], strides = [1, 1]} : vector<168x92xf32> to vector<48x1xf32>
    %20 = arith.addf %12, %19 : vector<48x1xf32>
    %cst_10 = arith.constant 0.000000e+00 : f32
    %21 = vector.broadcast %cst_10 : f32 to vector<48x1xf32>
    %22 = arith.cmpf ogt, %20, %21 : vector<48x1xf32>
    %cst_11 = arith.constant 0.00999999977 : f32
    %23 = vector.broadcast %cst_11 : f32 to vector<48x1xf32>
    %24 = arith.mulf %23, %20 : vector<48x1xf32>
    %25 = arith.select %22, %20, %24 : vector<48x1xi1>, vector<48x1xf32>
    %26 = vector.extract_strided_slice %11 {offsets = [120, 1], sizes = [48, 1], strides = [1, 1]} : vector<168x92xf32> to vector<48x1xf32>
    %27 = arith.addf %12, %26 : vector<48x1xf32>
    %cst_12 = arith.constant 0.000000e+00 : f32
    %28 = vector.broadcast %cst_12 : f32 to vector<48x1xf32>
    %29 = arith.cmpf ogt, %27, %28 : vector<48x1xf32>
    %cst_13 = arith.constant 0.00999999977 : f32
    %30 = vector.broadcast %cst_13 : f32 to vector<48x1xf32>
    %31 = arith.mulf %30, %27 : vector<48x1xf32>
    %32 = arith.select %29, %27, %31 : vector<48x1xi1>, vector<48x1xf32>
    %33 = arith.maximumf %25, %32 : vector<48x1xf32>
    %34 = arith.subf %25, %33 : vector<48x1xf32>
    %35 = math.exp %34 : vector<48x1xf32>
    %36 = arith.subf %32, %33 : vector<48x1xf32>
    %37 = math.exp %36 : vector<48x1xf32>
    %38 = arith.addf %35, %37 : vector<48x1xf32>
    %cst_14 = arith.constant 1.000000e+00 : f32
    %39 = vector.broadcast %cst_14 : f32 to vector<48x1xf32>
    %40 = arith.divf %39, %38 : vector<48x1xf32>
    %41 = arith.mulf %35, %40 : vector<48x1xf32>
    %42 = arith.mulf %37, %40 : vector<48x1xf32>
    %43 = vector.extract_strided_slice %11 {offsets = [72, 10], sizes = [48, 8], strides = [1, 1]} : vector<168x92xf32> to vector<48x8xf32>
    %44 = vector.extract_strided_slice %11 {offsets = [120, 10], sizes = [48, 8], strides = [1, 1]} : vector<168x92xf32> to vector<48x8xf32>
    %45 = vector.broadcast %41 : vector<48x1xf32> to vector<48x8xf32>
    %46 = arith.mulf %45, %43 : vector<48x8xf32>
    %47 = vector.broadcast %42 : vector<48x1xf32> to vector<48x8xf32>
    %48 = arith.mulf %47, %44 : vector<48x8xf32>
    %49 = arith.addf %46, %48 : vector<48x8xf32>
    %50 = vector.extract_strided_slice %13 {offsets = [0, 0], sizes = [12, 1], strides = [1, 1]} : vector<48x1xf32> to vector<12x1xf32>
    %51 = arith.addf %16, %50 : vector<12x1xf32>
    %cst_15 = arith.constant 0.000000e+00 : f32
    %52 = vector.broadcast %cst_15 : f32 to vector<12x1xf32>
    %53 = arith.cmpf ogt, %51, %52 : vector<12x1xf32>
    %cst_16 = arith.constant 0.00999999977 : f32
    %54 = vector.broadcast %cst_16 : f32 to vector<12x1xf32>
    %55 = arith.mulf %54, %51 : vector<12x1xf32>
    %56 = arith.select %53, %51, %55 : vector<12x1xi1>, vector<12x1xf32>
    %57 = vector.extract_strided_slice %13 {offsets = [12, 0], sizes = [12, 1], strides = [1, 1]} : vector<48x1xf32> to vector<12x1xf32>
    %58 = arith.addf %16, %57 : vector<12x1xf32>
    %cst_17 = arith.constant 0.000000e+00 : f32
    %59 = vector.broadcast %cst_17 : f32 to vector<12x1xf32>
    %60 = arith.cmpf ogt, %58, %59 : vector<12x1xf32>
    %cst_18 = arith.constant 0.00999999977 : f32
    %61 = vector.broadcast %cst_18 : f32 to vector<12x1xf32>
    %62 = arith.mulf %61, %58 : vector<12x1xf32>
    %63 = arith.select %60, %58, %62 : vector<12x1xi1>, vector<12x1xf32>
    %64 = vector.extract_strided_slice %13 {offsets = [24, 0], sizes = [12, 1], strides = [1, 1]} : vector<48x1xf32> to vector<12x1xf32>
    %65 = arith.addf %16, %64 : vector<12x1xf32>
    %cst_19 = arith.constant 0.000000e+00 : f32
    %66 = vector.broadcast %cst_19 : f32 to vector<12x1xf32>
    %67 = arith.cmpf ogt, %65, %66 : vector<12x1xf32>
    %cst_20 = arith.constant 0.00999999977 : f32
    %68 = vector.broadcast %cst_20 : f32 to vector<12x1xf32>
    %69 = arith.mulf %68, %65 : vector<12x1xf32>
    %70 = arith.select %67, %65, %69 : vector<12x1xi1>, vector<12x1xf32>
    %71 = vector.extract_strided_slice %13 {offsets = [36, 0], sizes = [12, 1], strides = [1, 1]} : vector<48x1xf32> to vector<12x1xf32>
    %72 = arith.addf %16, %71 : vector<12x1xf32>
    %cst_21 = arith.constant 0.000000e+00 : f32
    %73 = vector.broadcast %cst_21 : f32 to vector<12x1xf32>
    %74 = arith.cmpf ogt, %72, %73 : vector<12x1xf32>
    %cst_22 = arith.constant 0.00999999977 : f32
    %75 = vector.broadcast %cst_22 : f32 to vector<12x1xf32>
    %76 = arith.mulf %75, %72 : vector<12x1xf32>
    %77 = arith.select %74, %72, %76 : vector<12x1xi1>, vector<12x1xf32>
    %78 = arith.maximumf %56, %63 : vector<12x1xf32>
    %79 = arith.maximumf %78, %70 : vector<12x1xf32>
    %80 = arith.maximumf %79, %77 : vector<12x1xf32>
    %81 = arith.subf %56, %80 : vector<12x1xf32>
    %82 = math.exp %81 : vector<12x1xf32>
    %83 = arith.subf %63, %80 : vector<12x1xf32>
    %84 = math.exp %83 : vector<12x1xf32>
    %85 = arith.subf %70, %80 : vector<12x1xf32>
    %86 = math.exp %85 : vector<12x1xf32>
    %87 = arith.subf %77, %80 : vector<12x1xf32>
    %88 = math.exp %87 : vector<12x1xf32>
    %89 = arith.addf %82, %84 : vector<12x1xf32>
    %90 = arith.addf %89, %86 : vector<12x1xf32>
    %91 = arith.addf %90, %88 : vector<12x1xf32>
    %cst_23 = arith.constant 1.000000e+00 : f32
    %92 = vector.broadcast %cst_23 : f32 to vector<12x1xf32>
    %93 = arith.divf %92, %91 : vector<12x1xf32>
    %94 = arith.mulf %82, %93 : vector<12x1xf32>
    %95 = arith.mulf %84, %93 : vector<12x1xf32>
    %96 = arith.mulf %86, %93 : vector<12x1xf32>
    %97 = arith.mulf %88, %93 : vector<12x1xf32>
    %98 = vector.extract_strided_slice %15 {offsets = [0, 0], sizes = [12, 8], strides = [1, 1]} : vector<48x8xf32> to vector<12x8xf32>
    %99 = vector.broadcast %94 : vector<12x1xf32> to vector<12x8xf32>
    %100 = arith.mulf %99, %98 : vector<12x8xf32>
    %101 = vector.extract_strided_slice %15 {offsets = [12, 0], sizes = [12, 8], strides = [1, 1]} : vector<48x8xf32> to vector<12x8xf32>
    %102 = vector.broadcast %95 : vector<12x1xf32> to vector<12x8xf32>
    %103 = arith.mulf %102, %101 : vector<12x8xf32>
    %104 = arith.addf %100, %103 : vector<12x8xf32>
    %105 = vector.extract_strided_slice %15 {offsets = [24, 0], sizes = [12, 8], strides = [1, 1]} : vector<48x8xf32> to vector<12x8xf32>
    %106 = vector.broadcast %96 : vector<12x1xf32> to vector<12x8xf32>
    %107 = arith.mulf %106, %105 : vector<12x8xf32>
    %108 = arith.addf %104, %107 : vector<12x8xf32>
    %109 = vector.extract_strided_slice %15 {offsets = [36, 0], sizes = [12, 8], strides = [1, 1]} : vector<48x8xf32> to vector<12x8xf32>
    %110 = vector.broadcast %97 : vector<12x1xf32> to vector<12x8xf32>
    %111 = arith.mulf %110, %109 : vector<12x8xf32>
    %112 = arith.addf %108, %111 : vector<12x8xf32>
    %113 = vector.extract_strided_slice %0 {offsets = [0, 84], sizes = [8, 8], strides = [1, 1]} : vector<8x92xf32> to vector<8x8xf32>
    %114 = tpu.concatenate %49, %112 in 0 : vector<48x8xf32>, vector<12x8xf32> -> vector<60x8xf32>
    %115 = tpu.concatenate %14, %17 in 0 : vector<48x8xf32>, vector<12x8xf32> -> vector<60x8xf32>
    %cst_24 = arith.constant dense<0.000000e+00> : vector<60x8xf32>
    %116 = tpu.matmul %114, %113, %cst_24 {dimension_numbers = #tpu.dot_dimension_numbers<[1], [0], [0], [1], [0, 0, 1, 1], [], []>} : vector<60x8xf32>, vector<8x8xf32>, vector<60x8xf32> -> vector<60x8xf32>
    %117 = arith.addf %115, %116 : vector<60x8xf32>
    %118 = arith.negf %117 : vector<60x8xf32>
    %119 = math.exp %118 : vector<60x8xf32>
    %cst_25 = arith.constant 1.000000e+00 : f32
    %120 = vector.broadcast %cst_25 : f32 to vector<60x8xf32>
    %121 = arith.addf %120, %119 : vector<60x8xf32>
    %122 = arith.divf %120, %121 : vector<60x8xf32>
    %123 = vector.extract_strided_slice %0 {offsets = [0, 74], sizes = [8, 10], strides = [1, 1]} : vector<8x92xf32> to vector<8x10xf32>
    %cst_26 = arith.constant dense<0.000000e+00> : vector<60x10xf32>
    %124 = tpu.matmul %122, %123, %cst_26 {dimension_numbers = #tpu.dot_dimension_numbers<[1], [0], [0], [1], [0, 0, 1, 1], [], []>} : vector<60x8xf32>, vector<8x10xf32>, vector<60x10xf32> -> vector<60x10xf32>
    %125 = vector.extract_strided_slice %124 {offsets = [0, 1], sizes = [48, 1], strides = [1, 1]} : vector<60x10xf32> to vector<48x1xf32>
    %126 = vector.extract_strided_slice %124 {offsets = [0, 2], sizes = [48, 8], strides = [1, 1]} : vector<60x10xf32> to vector<48x8xf32>
    %127 = vector.extract_strided_slice %124 {offsets = [48, 0], sizes = [12, 1], strides = [1, 1]} : vector<60x10xf32> to vector<12x1xf32>
    %128 = vector.extract_strided_slice %125 {offsets = [0, 0], sizes = [12, 1], strides = [1, 1]} : vector<48x1xf32> to vector<12x1xf32>
    %129 = arith.addf %127, %128 : vector<12x1xf32>
    %cst_27 = arith.constant 0.000000e+00 : f32
    %130 = vector.broadcast %cst_27 : f32 to vector<12x1xf32>
    %131 = arith.cmpf ogt, %129, %130 : vector<12x1xf32>
    %cst_28 = arith.constant 0.00999999977 : f32
    %132 = vector.broadcast %cst_28 : f32 to vector<12x1xf32>
    %133 = arith.mulf %132, %129 : vector<12x1xf32>
    %134 = arith.select %131, %129, %133 : vector<12x1xi1>, vector<12x1xf32>
    %135 = vector.extract_strided_slice %125 {offsets = [12, 0], sizes = [12, 1], strides = [1, 1]} : vector<48x1xf32> to vector<12x1xf32>
    %136 = arith.addf %127, %135 : vector<12x1xf32>
    %cst_29 = arith.constant 0.000000e+00 : f32
    %137 = vector.broadcast %cst_29 : f32 to vector<12x1xf32>
    %138 = arith.cmpf ogt, %136, %137 : vector<12x1xf32>
    %cst_30 = arith.constant 0.00999999977 : f32
    %139 = vector.broadcast %cst_30 : f32 to vector<12x1xf32>
    %140 = arith.mulf %139, %136 : vector<12x1xf32>
    %141 = arith.select %138, %136, %140 : vector<12x1xi1>, vector<12x1xf32>
    %142 = vector.extract_strided_slice %125 {offsets = [24, 0], sizes = [12, 1], strides = [1, 1]} : vector<48x1xf32> to vector<12x1xf32>
    %143 = arith.addf %127, %142 : vector<12x1xf32>
    %cst_31 = arith.constant 0.000000e+00 : f32
    %144 = vector.broadcast %cst_31 : f32 to vector<12x1xf32>
    %145 = arith.cmpf ogt, %143, %144 : vector<12x1xf32>
    %cst_32 = arith.constant 0.00999999977 : f32
    %146 = vector.broadcast %cst_32 : f32 to vector<12x1xf32>
    %147 = arith.mulf %146, %143 : vector<12x1xf32>
    %148 = arith.select %145, %143, %147 : vector<12x1xi1>, vector<12x1xf32>
    %149 = vector.extract_strided_slice %125 {offsets = [36, 0], sizes = [12, 1], strides = [1, 1]} : vector<48x1xf32> to vector<12x1xf32>
    %150 = arith.addf %127, %149 : vector<12x1xf32>
    %cst_33 = arith.constant 0.000000e+00 : f32
    %151 = vector.broadcast %cst_33 : f32 to vector<12x1xf32>
    %152 = arith.cmpf ogt, %150, %151 : vector<12x1xf32>
    %cst_34 = arith.constant 0.00999999977 : f32
    %153 = vector.broadcast %cst_34 : f32 to vector<12x1xf32>
    %154 = arith.mulf %153, %150 : vector<12x1xf32>
    %155 = arith.select %152, %150, %154 : vector<12x1xi1>, vector<12x1xf32>
    %156 = arith.maximumf %134, %141 : vector<12x1xf32>
    %157 = arith.maximumf %156, %148 : vector<12x1xf32>
    %158 = arith.maximumf %157, %155 : vector<12x1xf32>
    %159 = arith.subf %134, %158 : vector<12x1xf32>
    %160 = math.exp %159 : vector<12x1xf32>
    %161 = arith.subf %141, %158 : vector<12x1xf32>
    %162 = math.exp %161 : vector<12x1xf32>
    %163 = arith.subf %148, %158 : vector<12x1xf32>
    %164 = math.exp %163 : vector<12x1xf32>
    %165 = arith.subf %155, %158 : vector<12x1xf32>
    %166 = math.exp %165 : vector<12x1xf32>
    %167 = arith.addf %160, %162 : vector<12x1xf32>
    %168 = arith.addf %167, %164 : vector<12x1xf32>
    %169 = arith.addf %168, %166 : vector<12x1xf32>
    %cst_35 = arith.constant 1.000000e+00 : f32
    %170 = vector.broadcast %cst_35 : f32 to vector<12x1xf32>
    %171 = arith.divf %170, %169 : vector<12x1xf32>
    %172 = arith.mulf %160, %171 : vector<12x1xf32>
    %173 = arith.mulf %162, %171 : vector<12x1xf32>
    %174 = arith.mulf %164, %171 : vector<12x1xf32>
    %175 = arith.mulf %166, %171 : vector<12x1xf32>
    %176 = vector.extract_strided_slice %126 {offsets = [0, 0], sizes = [12, 8], strides = [1, 1]} : vector<48x8xf32> to vector<12x8xf32>
    %177 = vector.broadcast %172 : vector<12x1xf32> to vector<12x8xf32>
    %178 = arith.mulf %177, %176 : vector<12x8xf32>
    %179 = vector.extract_strided_slice %126 {offsets = [12, 0], sizes = [12, 8], strides = [1, 1]} : vector<48x8xf32> to vector<12x8xf32>
    %180 = vector.broadcast %173 : vector<12x1xf32> to vector<12x8xf32>
    %181 = arith.mulf %180, %179 : vector<12x8xf32>
    %182 = arith.addf %178, %181 : vector<12x8xf32>
    %183 = vector.extract_strided_slice %126 {offsets = [24, 0], sizes = [12, 8], strides = [1, 1]} : vector<48x8xf32> to vector<12x8xf32>
    %184 = vector.broadcast %174 : vector<12x1xf32> to vector<12x8xf32>
    %185 = arith.mulf %184, %183 : vector<12x8xf32>
    %186 = arith.addf %182, %185 : vector<12x8xf32>
    %187 = vector.extract_strided_slice %126 {offsets = [36, 0], sizes = [12, 8], strides = [1, 1]} : vector<48x8xf32> to vector<12x8xf32>
    %188 = vector.broadcast %175 : vector<12x1xf32> to vector<12x8xf32>
    %189 = arith.mulf %188, %187 : vector<12x8xf32>
    %190 = arith.addf %186, %189 : vector<12x8xf32>
    %191 = vector.extract_strided_slice %41 {offsets = [0, 0], sizes = [12, 1], strides = [1, 1]} : vector<48x1xf32> to vector<12x1xf32>
    %192 = vector.extract_strided_slice %42 {offsets = [0, 0], sizes = [12, 1], strides = [1, 1]} : vector<48x1xf32> to vector<12x1xf32>
    %193 = vector.extract_strided_slice %41 {offsets = [12, 0], sizes = [12, 1], strides = [1, 1]} : vector<48x1xf32> to vector<12x1xf32>
    %194 = vector.extract_strided_slice %42 {offsets = [12, 0], sizes = [12, 1], strides = [1, 1]} : vector<48x1xf32> to vector<12x1xf32>
    %195 = vector.extract_strided_slice %41 {offsets = [24, 0], sizes = [12, 1], strides = [1, 1]} : vector<48x1xf32> to vector<12x1xf32>
    %196 = vector.extract_strided_slice %42 {offsets = [24, 0], sizes = [12, 1], strides = [1, 1]} : vector<48x1xf32> to vector<12x1xf32>
    %197 = vector.extract_strided_slice %41 {offsets = [36, 0], sizes = [12, 1], strides = [1, 1]} : vector<48x1xf32> to vector<12x1xf32>
    %198 = vector.extract_strided_slice %42 {offsets = [36, 0], sizes = [12, 1], strides = [1, 1]} : vector<48x1xf32> to vector<12x1xf32>
    %199 = tpu.concatenate %172, %191, %192, %173, %193, %194, %174, %195, %196, %175, %197, %198 in 1 : vector<12x1xf32>, vector<12x1xf32>, vector<12x1xf32>, vector<12x1xf32>, vector<12x1xf32>, vector<12x1xf32>, vector<12x1xf32>, vector<12x1xf32>, vector<12x1xf32>, vector<12x1xf32>, vector<12x1xf32>, vector<12x1xf32> -> vector<12x12xf32>
    %c0_36 = arith.constant 0 : index
    %c0_37 = arith.constant 0 : index
    %200 = vector.load %arg5[%c0_36, %c0_37] : memref<12x12xf32, #tpu.memory_space<vmem>>, vector<12x12xf32>
    tpu.vector_store %arg5[%c0_36, %c0_37], %199 {strides = array<i32>} : memref<12x12xf32, #tpu.memory_space<vmem>>, vector<12x12xf32>,
    %201 = vector.extract_strided_slice %1 {offsets = [16, 0], sizes = [8, 56], strides = [1, 1]} : vector<24x128xf32> to vector<8x56xf32>
    %202 = vector.extract_strided_slice %1 {offsets = [0, 72], sizes = [1, 56], strides = [1, 1]} : vector<24x128xf32> to vector<1x56xf32>
    %cst_38 = arith.constant dense<0.000000e+00> : vector<12x56xf32>
    %203 = tpu.matmul %190, %201, %cst_38 {dimension_numbers = #tpu.dot_dimension_numbers<[1], [0], [0], [1], [0, 0, 1, 1], [], []>} : vector<12x8xf32>, vector<8x56xf32>, vector<12x56xf32> -> vector<12x56xf32>
    %204 = arith.addf %18, %203 : vector<12x56xf32>
    %205 = vector.broadcast %202 : vector<1x56xf32> to vector<12x56xf32>
    %206 = arith.addf %204, %205 : vector<12x56xf32>
    %207 = vector.extract_strided_slice %1 {offsets = [0, 0], sizes = [16, 40], strides = [1, 1]} : vector<24x128xf32> to vector<16x40xf32>
    %208 = vector.extract_strided_slice %1 {offsets = [0, 56], sizes = [24, 16], strides = [1, 1]} : vector<24x128xf32> to vector<24x16xf32>
    %209 = vector.extract_strided_slice %1 {offsets = [16, 56], sizes = [8, 16], strides = [1, 1]} : vector<24x128xf32> to vector<8x16xf32>
    %210 = vector.extract_strided_slice %190 {offsets = [0, 0], sizes = [4, 8], strides = [1, 1]} : vector<12x8xf32> to vector<4x8xf32>
    %211 = vector.extract_strided_slice %206 {offsets = [0, 32], sizes = [4, 8], strides = [1, 1]} : vector<12x56xf32> to vector<4x8xf32>
    %212 = vector.extract_strided_slice %206 {offsets = [0, 40], sizes = [4, 16], strides = [1, 1]} : vector<12x56xf32> to vector<4x16xf32>
    %213 = arith.negf %211 : vector<4x8xf32>
    %214 = math.exp %213 : vector<4x8xf32>
    %cst_39 = arith.constant 1.000000e+00 : f32
    %215 = vector.broadcast %cst_39 : f32 to vector<4x8xf32>
    %216 = arith.addf %215, %214 : vector<4x8xf32>
    %217 = arith.divf %215, %216 : vector<4x8xf32>
    %218 = arith.mulf %217, %210 : vector<4x8xf32>
    %cst_40 = arith.constant dense<0.000000e+00> : vector<4x16xf32>
    %219 = tpu.matmul %218, %209, %cst_40 {dimension_numbers = #tpu.dot_dimension_numbers<[1], [0], [0], [1], [0, 0, 1, 1], [], []>} : vector<4x8xf32>, vector<8x16xf32>, vector<4x16xf32> -> vector<4x16xf32>
    %220 = arith.addf %212, %219 : vector<4x16xf32>
    %221 = math.tanh %220 : vector<4x16xf32>
    %222 = vector.extract_strided_slice %190 {offsets = [4, 0], sizes = [4, 8], strides = [1, 1]} : vector<12x8xf32> to vector<4x8xf32>
    %223 = vector.extract_strided_slice %206 {offsets = [4, 0], sizes = [4, 16], strides = [1, 1]} : vector<12x56xf32> to vector<4x16xf32>
    %224 = vector.extract_strided_slice %206 {offsets = [4, 16], sizes = [4, 16], strides = [1, 1]} : vector<12x56xf32> to vector<4x16xf32>
    %225 = vector.extract_strided_slice %206 {offsets = [4, 32], sizes = [4, 8], strides = [1, 1]} : vector<12x56xf32> to vector<4x8xf32>
    %226 = vector.extract_strided_slice %206 {offsets = [4, 40], sizes = [4, 16], strides = [1, 1]} : vector<12x56xf32> to vector<4x16xf32>
    %cst_41 = arith.constant dense<0.000000e+00> : vector<4x40xf32>
    %227 = tpu.matmul %221, %207, %cst_41 {dimension_numbers = #tpu.dot_dimension_numbers<[1], [0], [0], [1], [0, 0, 1, 1], [], []>} : vector<4x16xf32>, vector<16x40xf32>, vector<4x40xf32> -> vector<4x40xf32>
    %228 = vector.extract_strided_slice %227 {offsets = [0, 0], sizes = [4, 16], strides = [1, 1]} : vector<4x40xf32> to vector<4x16xf32>
    %229 = arith.addf %223, %228 : vector<4x16xf32>
    %230 = arith.negf %229 : vector<4x16xf32>
    %231 = math.exp %230 : vector<4x16xf32>
    %cst_42 = arith.constant 1.000000e+00 : f32
    %232 = vector.broadcast %cst_42 : f32 to vector<4x16xf32>
    %233 = arith.addf %232, %231 : vector<4x16xf32>
    %234 = arith.divf %232, %233 : vector<4x16xf32>
    %235 = vector.extract_strided_slice %227 {offsets = [0, 16], sizes = [4, 16], strides = [1, 1]} : vector<4x40xf32> to vector<4x16xf32>
    %236 = arith.addf %224, %235 : vector<4x16xf32>
    %237 = arith.negf %236 : vector<4x16xf32>
    %238 = math.exp %237 : vector<4x16xf32>
    %cst_43 = arith.constant 1.000000e+00 : f32
    %239 = vector.broadcast %cst_43 : f32 to vector<4x16xf32>
    %240 = arith.addf %239, %238 : vector<4x16xf32>
    %241 = arith.divf %239, %240 : vector<4x16xf32>
    %242 = vector.extract_strided_slice %227 {offsets = [0, 32], sizes = [4, 8], strides = [1, 1]} : vector<4x40xf32> to vector<4x8xf32>
    %243 = arith.addf %225, %242 : vector<4x8xf32>
    %244 = arith.negf %243 : vector<4x8xf32>
    %245 = math.exp %244 : vector<4x8xf32>
    %cst_44 = arith.constant 1.000000e+00 : f32
    %246 = vector.broadcast %cst_44 : f32 to vector<4x8xf32>
    %247 = arith.addf %246, %245 : vector<4x8xf32>
    %248 = arith.divf %246, %247 : vector<4x8xf32>
    %249 = arith.mulf %241, %221 : vector<4x16xf32>
    %250 = arith.mulf %248, %222 : vector<4x8xf32>
    %251 = tpu.concatenate %249, %250 in 1 : vector<4x16xf32>, vector<4x8xf32> -> vector<4x24xf32>
    %cst_45 = arith.constant dense<0.000000e+00> : vector<4x16xf32>
    %252 = tpu.matmul %251, %208, %cst_45 {dimension_numbers = #tpu.dot_dimension_numbers<[1], [0], [0], [1], [0, 0, 1, 1], [], []>} : vector<4x24xf32>, vector<24x16xf32>, vector<4x16xf32> -> vector<4x16xf32>
    %253 = arith.addf %226, %252 : vector<4x16xf32>
    %254 = math.tanh %253 : vector<4x16xf32>
    %cst_46 = arith.constant 1.000000e+00 : f32
    %255 = vector.broadcast %cst_46 : f32 to vector<4x16xf32>
    %256 = arith.subf %255, %234 : vector<4x16xf32>
    %257 = arith.mulf %256, %221 : vector<4x16xf32>
    %258 = arith.mulf %234, %254 : vector<4x16xf32>
    %259 = arith.addf %257, %258 : vector<4x16xf32>
    %260 = vector.extract_strided_slice %190 {offsets = [8, 0], sizes = [4, 8], strides = [1, 1]} : vector<12x8xf32> to vector<4x8xf32>
    %261 = vector.extract_strided_slice %206 {offsets = [8, 0], sizes = [4, 16], strides = [1, 1]} : vector<12x56xf32> to vector<4x16xf32>
    %262 = vector.extract_strided_slice %206 {offsets = [8, 16], sizes = [4, 16], strides = [1, 1]} : vector<12x56xf32> to vector<4x16xf32>
    %263 = vector.extract_strided_slice %206 {offsets = [8, 32], sizes = [4, 8], strides = [1, 1]} : vector<12x56xf32> to vector<4x8xf32>
    %264 = vector.extract_strided_slice %206 {offsets = [8, 40], sizes = [4, 16], strides = [1, 1]} : vector<12x56xf32> to vector<4x16xf32>
    %cst_47 = arith.constant dense<0.000000e+00> : vector<4x40xf32>
    %265 = tpu.matmul %259, %207, %cst_47 {dimension_numbers = #tpu.dot_dimension_numbers<[1], [0], [0], [1], [0, 0, 1, 1], [], []>} : vector<4x16xf32>, vector<16x40xf32>, vector<4x40xf32> -> vector<4x40xf32>
    %266 = vector.extract_strided_slice %265 {offsets = [0, 0], sizes = [4, 16], strides = [1, 1]} : vector<4x40xf32> to vector<4x16xf32>
    %267 = arith.addf %261, %266 : vector<4x16xf32>
    %268 = arith.negf %267 : vector<4x16xf32>
    %269 = math.exp %268 : vector<4x16xf32>
    %cst_48 = arith.constant 1.000000e+00 : f32
    %270 = vector.broadcast %cst_48 : f32 to vector<4x16xf32>
    %271 = arith.addf %270, %269 : vector<4x16xf32>
    %272 = arith.divf %270, %271 : vector<4x16xf32>
    %273 = vector.extract_strided_slice %265 {offsets = [0, 16], sizes = [4, 16], strides = [1, 1]} : vector<4x40xf32> to vector<4x16xf32>
    %274 = arith.addf %262, %273 : vector<4x16xf32>
    %275 = arith.negf %274 : vector<4x16xf32>
    %276 = math.exp %275 : vector<4x16xf32>
    %cst_49 = arith.constant 1.000000e+00 : f32
    %277 = vector.broadcast %cst_49 : f32 to vector<4x16xf32>
    %278 = arith.addf %277, %276 : vector<4x16xf32>
    %279 = arith.divf %277, %278 : vector<4x16xf32>
    %280 = vector.extract_strided_slice %265 {offsets = [0, 32], sizes = [4, 8], strides = [1, 1]} : vector<4x40xf32> to vector<4x8xf32>
    %281 = arith.addf %263, %280 : vector<4x8xf32>
    %282 = arith.negf %281 : vector<4x8xf32>
    %283 = math.exp %282 : vector<4x8xf32>
    %cst_50 = arith.constant 1.000000e+00 : f32
    %284 = vector.broadcast %cst_50 : f32 to vector<4x8xf32>
    %285 = arith.addf %284, %283 : vector<4x8xf32>
    %286 = arith.divf %284, %285 : vector<4x8xf32>
    %287 = arith.mulf %279, %259 : vector<4x16xf32>
    %288 = arith.mulf %286, %260 : vector<4x8xf32>
    %289 = tpu.concatenate %287, %288 in 1 : vector<4x16xf32>, vector<4x8xf32> -> vector<4x24xf32>
    %cst_51 = arith.constant dense<0.000000e+00> : vector<4x16xf32>
    %290 = tpu.matmul %289, %208, %cst_51 {dimension_numbers = #tpu.dot_dimension_numbers<[1], [0], [0], [1], [0, 0, 1, 1], [], []>} : vector<4x24xf32>, vector<24x16xf32>, vector<4x16xf32> -> vector<4x16xf32>
    %291 = arith.addf %264, %290 : vector<4x16xf32>
    %292 = math.tanh %291 : vector<4x16xf32>
    %cst_52 = arith.constant 1.000000e+00 : f32
    %293 = vector.broadcast %cst_52 : f32 to vector<4x16xf32>
    %294 = arith.subf %293, %272 : vector<4x16xf32>
    %295 = arith.mulf %294, %259 : vector<4x16xf32>
    %296 = arith.mulf %272, %292 : vector<4x16xf32>
    %297 = arith.addf %295, %296 : vector<4x16xf32>
    %298 = tpu.concatenate %221, %259, %297 in 1 : vector<4x16xf32>, vector<4x16xf32>, vector<4x16xf32> -> vector<4x48xf32>
    %c0_53 = arith.constant 0 : index
    %c0_54 = arith.constant 0 : index
    %299 = vector.load %arg4[%c0_53, %c0_54] : memref<4x48xf32, #tpu.memory_space<vmem>>, vector<4x48xf32>
    tpu.vector_store %arg4[%c0_53, %c0_54], %298 {strides = array<i32>} : memref<4x48xf32, #tpu.memory_space<vmem>>, vector<4x48xf32>,
    return
  }
}

</mosaic_0001>

<bundles_post_ra>
// kernel: gru_neighbor_forward.1
= control target key start
LH: loop header
LB: loop body
LE: loop exit
PB: predicated region body
PF: predicated region fallthrough
CT: control target
= control target key end

     0   :  { %v2958_v0 = vmov 0   ;;  %v2959_v5 = vmov 0.0|0.0   ;;  %vm2960_vm0 = vmmov 0   ;;  %v2961_v6 = vmov 0.0   ;;  %s2962_s22 = smov 127   ;;  %s2963_s23 = smov 118   ;;  %s3800_s0 = inlined_call_operand.vmem [shape: s32[168,1], index: 0, kind: input, shape index: {}]   ;;  %s3801_s1 = inlined_call_operand.vmem [shape: f32[48,8], index: 1, kind: input, shape index: {}]   ;;  %s3802_s2 = inlined_call_operand.vmem [shape: f32[8,92], index: 2, kind: input, shape index: {}]   ;;  %s3803_s3 = inlined_call_operand.vmem [shape: f32[24,128], index: 3, kind: input, shape index: {}]   ;;  %s3804_s5 = inlined_call_operand.vmem [shape: f32[12,12], index: 5, kind: output, shape index: {1}]   ;;  %s3805_s4 = inlined_call_operand.vmem [shape: f32[4,48], index: 4, kind: output, shape index: {0}]  }
   0x1   :  { %2825 = vset.pattern.permute.xlu1 %v2958_v0  ;;  %2824 = vset.pattern.permute.xlu0 %v2958_v0  ;;  %v25_v1 = vld [vmem:[%s3800_s0 + $0x10] sm:$0xff]  ;;  %v23_v2 = vld [vmem:[%s3800_s0] sm:$0xff]  ;;  %v26_v3 = vld [vmem:[%s3800_s0 + $0x18] sm:$0xff]  ;;  %v3806_v33 = vlaneseq  ;;  %vm157_vm1 = vcmask 392192   ;;  %s2964_s24 = smov 44   ;;  %s2965_s25 = smov 10  }
   0x2   :  { %53 = vperm.xlu1 %2825, %v25_v1   ;;  %47 = vperm.xlu0 %2824, %v23_v2   ;;  %v24_v4 = vld [vmem:[%s3800_s0 + $0x8] sm:$0xff]  ;;  %v27_v8 = vld [vmem:[%s3800_s0 + $0x20] sm:$0xff]  ;;  %v153_v11 = vld [vmem:[%s3801_s1 + $0x10] sm:$0xff]  ;;  %s2966_s26 = smov 2   ;;  %s2968_s29 = smov 54  }
   0x3   :  { %2770 = vmatprep.subr.bf16.mxu0 %v2959_v5  ;;  %2572 = vmatprep.mubr.msk.f32.mxu0 %vm2960_vm0, %v2961_v6  ;;  %v28_v7 = vld [vmem:[%s3800_s0 + $0x28] sm:$0xff]  ;;  %v151_v9 = vld [vmem:[%s3801_s1] sm:$0xff]  ;;  %v154_v13 = vld [vmem:[%s3801_s1 + $0x18] sm:$0xff]  ;;  %v3111_v34 = vand.u32 127, %v3806_v33  ;;  %s2969_s8 = smov 74   ;;  %s2970_s9 = smov 18  }
   0x4   :  { %2635 = vmatprep.subr.mxu1 %v2961_v6  ;;  %2637 = vmatprep.mubr.msk.f32.mxu1 %vm2960_vm0, %v2961_v6  ;;  %v152_v10 = vld [vmem:[%s3801_s1 + $0x8] sm:$0xff]  ;;  %v30_v14 = vld [vmem:[%s3800_s0 + $0x38] sm:$0xff]  ;;  %v29_v15 = vld [vmem:[%s3800_s0 + $0x30] sm:$0xff]  ;;  %v2774_v16 = vpack.c.bf16 %v154_v13, %v153_v11  ;;  %s2971_s10 = smov 48   ;;  %s2972_s11 = smov 72  }
   0x5   :  { %v2771_v12 = vpack.c.bf16 %v152_v10, %v151_v9  ;;  %v155_v17 = vld [vmem:[%s3801_s1 + $0x20] sm:$0xff]  ;;  %v156_v18 = vld [vmem:[%s3801_s1 + $0x28] sm:$0xff]  ;;  %v34_v22 = vld [vmem:[%s3800_s0 + $0x58] sm:$0xff]  ;;  %s2967_s1 = smov 126   ;;  %s2973_s12 = smov 78  }
   0x6   :  { %56 = vperm.xlu1 %2825, %v26_v3   ;;  %50 = vperm.xlu0 %2824, %v24_v4   ;;  %v32_v19 = vld [vmem:[%s3800_s0 + $0x48] sm:$0xff]  ;;  %v31_v20 = vld [vmem:[%s3800_s0 + $0x40] sm:$0xff]  ;;  %v2777_v21 = vpack.c.bf16 %v156_v18, %v155_v17  ;;  %v33_v23 = vld [vmem:[%s3800_s0 + $0x50] sm:$0xff]  ;;  %s2974_s15 = smov 58   ;;  %s2976_s16 = smov 104  }
   0x7   :  { %2772 = vmatpush3.bf16.msra.mxu0 %v2771_v12  ;;  %v36_v24 = vld [vmem:[%s3800_s0 + $0x68] sm:$0xff]  ;;  %v35_v25 = vld [vmem:[%s3800_s0 + $0x60] sm:$0xff]  ;;  %v38_v26 = vld [vmem:[%s3800_s0 + $0x78] sm:$0xff]  ;;  %s2977_s17 = smov 94   ;;  %s2978_s18 = smov 88  }
   0x8   :  { %2773 = vmatprep.subr.bf16.mxu0 %v2959_v5  ;;  %v37_v27 = vld [vmem:[%s3800_s0 + $0x70] sm:$0xff]  ;;  %v40_v28 = vld [vmem:[%s3800_s0 + $0x88] sm:$0xff]  ;;  %v39_v29 = vld [vmem:[%s3800_s0 + $0x80] sm:$0xff]  ;;  %s2979_s19 = smov 16   ;;  %s2980_s20 = smov 110  }
   0x9   :  { %v42_v30 = vld [vmem:[%s3800_s0 + $0x98] sm:$0xff]  ;;  %v41_v31 = vld [vmem:[%s3800_s0 + $0x90] sm:$0xff]  ;;  %v43_v32 = vld [vmem:[%s3800_s0 + $0xa0] sm:$0xff]  ;;  %s2981_s0 = smov 1   ;;  %s2982_s21 = smov 3  }
   0xa   :  { %62 = vperm.xlu1 %2825, %v28_v7   ;;  %59 = vperm.xlu0 %2824, %v27_v8   ;;  %s2986_s27 = smov 7   ;;  %s2987_s28 = smov 8  }
   0xb   :  { %2775 = vmatpush3.bf16.msra.mxu0 %v2774_v16 }
   0xc   :  { %2776 = vmatprep.subr.bf16.mxu0 %v2959_v5 }
   0xe   :  { %68 = vperm.xlu1 %2825, %v30_v14   ;;  %65 = vperm.xlu0 %2824, %v29_v15   ;;  %v3219_v15 = vld [vmem:[%s3802_s2] sm:$0xff] }
   0xf   :  { %2778 = vmatpush3.bf16.msra.mxu0 %v2777_v21  ;;  %2636 = vmatpush3.msra.mxu1 %v3219_v15 }
  0x12   :  { %74 = vperm.xlu1 %2825, %v32_v19   ;;  %71 = vperm.xlu0 %2824, %v31_v20  }
  0x16   :  { %80 = vperm.xlu1 %2825, %v34_v22   ;;  %77 = vperm.xlu0 %2824, %v33_v23  }
  0x1a   :  { %86 = vperm.xlu1 %2825, %v36_v24   ;;  %83 = vperm.xlu0 %2824, %v35_v25  }
  0x1e   :  { %92 = vperm.xlu1 %2825, %v38_v26   ;;  %89 = vperm.xlu0 %2824, %v37_v27  }
  0x22   :  { %98 = vperm.xlu1 %2825, %v40_v28   ;;  %95 = vperm.xlu0 %2824, %v39_v29  }
  0x26   :  { %104 = vperm.xlu1 %2825, %v42_v30   ;;  %101 = vperm.xlu0 %2824, %v41_v31  }
  0x2a   :  { %107 = vperm.xlu0 %2824, %v43_v32  }
  0x81   :  { %v48_v35 = vpop.permute.xlu0 %47  ;;  %v54_v37 = vpop.permute.xlu1 %53 }
  0x82   :  { %vm109_vm2 = vcmp.eq.s32.totalorder %v48_v35, %v3111_v34  ;;  %vm111_vm3 = vcmp.eq.s32.totalorder %v54_v37, %v3111_v34 }
  0x83   :  { %v130_v36 = vsel %vm109_vm2, 1.0, %v2961_v6  ;;  %v132_v40 = vsel %vm111_vm3, 1.0, %v2961_v6 }
  0x84   :  { %2573 = vmatmul.mubr.msk.f32.vlgmr.msra.gmra.mrb[0].mxu0 %vm157_vm1, %v130_v36 }
  0x85   :  { %v51_v38 = vpop.permute.xlu0 %50  ;;  %2575 = vmatprep.mubr.msk.f32.mxu0 %vm2960_vm0, %v2961_v6  ;;  %v57_v41 = vpop.permute.xlu1 %56 }
  0x86   :  { %vm110_vm4 = vcmp.eq.s32.totalorder %v51_v38, %v3111_v34  ;;  %vm112_vm5 = vcmp.eq.s32.totalorder %v57_v41, %v3111_v34 }
  0x87   :  { %v131_v39 = vsel %vm110_vm4, 1.0, %v2961_v6  ;;  %v133_v43 = vsel %vm112_vm5, 1.0, %v2961_v6 }
  0x88   :  { %2576 = vmatmul.mubr.msk.f32.gmra.mrb[2].mxu0 %vm157_vm1, %v131_v39 }
  0x89   :  { %2578 = vmatprep.mubr.msk.f32.mxu0 %vm2960_vm0, %v2961_v6  ;;  %v60_v42 = vpop.permute.xlu0 %59  ;;  %v63_v44 = vpop.permute.xlu1 %62 }
  0x8a   :  { %vm113_vm6 = vcmp.eq.s32.totalorder %v60_v42, %v3111_v34  ;;  %vm114_vm7 = vcmp.eq.s32.totalorder %v63_v44, %v3111_v34 }
  0x8b   :  { %v134_v45 = vsel %vm113_vm6, 1.0, %v2961_v6  ;;  %v135_v47 = vsel %vm114_vm7, 1.0, %v2961_v6 }
  0x8c   :  { %2579 = vmatmul.mubr.msk.f32.gmra.mrb[4].mxu0 %vm157_vm1, %v132_v40 }
  0x8d   :  { %2581 = vmatprep.mubr.msk.f32.mxu0 %vm2960_vm0, %v2961_v6  ;;  %v66_v46 = vpop.permute.xlu0 %65  ;;  %v69_v48 = vpop.permute.xlu1 %68 }
  0x8e   :  { %vm115_vm8 = vcmp.eq.s32.totalorder %v66_v46, %v3111_v34  ;;  %vm116_vm9 = vcmp.eq.s32.totalorder %v69_v48, %v3111_v34 }
  0x8f   :  { %v136_v49 = vsel %vm115_vm8, 1.0, %v2961_v6  ;;  %v137_v51 = vsel %vm116_vm9, 1.0, %v2961_v6  ;;  %vm391_vm9 = vcmask 64512  }
  0x90   :  { %2582 = vmatmul.mubr.msk.f32.gmra.mrb[6].mxu0 %vm157_vm1, %v133_v43 }
  0x91   :  { %2584 = vmatprep.mubr.msk.f32.mxu0 %vm2960_vm0, %v2961_v6  ;;  %v72_v50 = vpop.permute.xlu0 %71  ;;  %v75_v52 = vpop.permute.xlu1 %74 }
  0x92   :  { %vm117_vm10 = vcmp.eq.s32.totalorder %v72_v50, %v3111_v34  ;;  %vm118_vm11 = vcmp.eq.s32.totalorder %v75_v52, %v3111_v34 }
  0x93   :  { %v138_v53 = vsel %vm117_vm10, 1.0, %v2961_v6  ;;  %v139_v55 = vsel %vm118_vm11, 1.0, %v2961_v6 }
  0x94   :  { %2585 = vmatmul.mubr.msk.f32.gmra.mrb[8].mxu0 %vm157_vm1, %v134_v45 }
  0x95   :  { %2587 = vmatprep.mubr.msk.f32.mxu0 %vm2960_vm0, %v2961_v6  ;;  %v78_v54 = vpop.permute.xlu0 %77  ;;  %v81_v56 = vpop.permute.xlu1 %80 }
  0x96   :  { %vm119_vm12 = vcmp.eq.s32.totalorder %v78_v54, %v3111_v34  ;;  %vm120_vm13 = vcmp.eq.s32.totalorder %v81_v56, %v3111_v34 }
  0x97   :  { %v140_v57 = vsel %vm119_vm12, 1.0, %v2961_v6  ;;  %v141_v59 = vsel %vm120_vm13, 1.0, %v2961_v6 }
  0x98   :  { %2588 = vmatmul.mubr.msk.f32.gmra.mrb[10].mxu0 %vm157_vm1, %v135_v47 }
  0x99   :  { %2590 = vmatprep.mubr.msk.f32.mxu0 %vm2960_vm0, %v2961_v6  ;;  %v84_v58 = vpop.permute.xlu0 %83  ;;  %v87_v60 = vpop.permute.xlu1 %86 }
  0x9a   :  { %vm121_vm14 = vcmp.eq.s32.totalorder %v84_v58, %v3111_v34  ;;  %vm122_vm15 = vcmp.eq.s32.totalorder %v87_v60, %v3111_v34 }
  0x9b   :  { %v142_v61 = vsel %vm121_vm14, 1.0, %v2961_v6  ;;  %v143_v63 = vsel %vm122_vm15, 1.0, %v2961_v6 }
  0x9c   :  { %2591 = vmatmul.mubr.msk.f32.gmra.mrb[12].mxu0 %vm157_vm1, %v136_v49 }
  0x9d   :  { %2593 = vmatprep.mubr.msk.f32.mxu0 %vm2960_vm0, %v2961_v6  ;;  %v90_v62 = vpop.permute.xlu0 %89  ;;  %v93_v0 = vpop.permute.xlu1 %92 }
  0x9e   :  { %vm123_vm2 = vcmp.eq.s32.totalorder %v90_v62, %v3111_v34  ;;  %vm124_vm3 = vcmp.eq.s32.totalorder %v93_v0, %v3111_v34 }
  0x9f   :  { %v144_v1 = vsel %vm123_vm2, 1.0, %v2961_v6  ;;  %v145_v3 = vsel %vm124_vm3, 1.0, %v2961_v6 }
  0xa0   :  { %2594 = vmatmul.mubr.msk.f32.gmra.mrb[14].mxu0 %vm157_vm1, %v137_v51 }
  0xa1   :  { %2596 = vmatprep.mubr.msk.f32.mxu0 %vm2960_vm0, %v2961_v6  ;;  %v96_v2 = vpop.permute.xlu0 %95  ;;  %v99_v4 = vpop.permute.xlu1 %98 }
  0xa2   :  { %vm125_vm4 = vcmp.eq.s32.totalorder %v96_v2, %v3111_v34  ;;  %vm126_vm5 = vcmp.eq.s32.totalorder %v99_v4, %v3111_v34 }
  0xa3   :  { %v146_v7 = vsel %vm125_vm4, 1.0, %v2961_v6  ;;  %v147_v9 = vsel %vm126_vm5, 1.0, %v2961_v6 }
  0xa4   :  { %2597 = vmatmul.mubr.msk.f32.gmra.mrb[16].mxu0 %vm157_vm1, %v138_v53 }
  0xa5   :  { %2599 = vmatprep.mubr.msk.f32.mxu0 %vm2960_vm0, %v2961_v6  ;;  %v102_v8 = vpop.permute.xlu0 %101  ;;  %v105_v10 = vpop.permute.xlu1 %104 }
  0xa6   :  { %vm127_vm6 = vcmp.eq.s32.totalorder %v102_v8, %v3111_v34  ;;  %vm128_vm7 = vcmp.eq.s32.totalorder %v105_v10, %v3111_v34 }
  0xa7   :  { %v148_v11 = vsel %vm127_vm6, 1.0, %v2961_v6  ;;  %v149_v13 = vsel %vm128_vm7, 1.0, %v2961_v6 }
  0xa8   :  { %2600 = vmatmul.mubr.msk.f32.gmra.mrb[18].mxu0 %vm157_vm1, %v139_v55 }
  0xa9   :  { %2602 = vmatprep.mubr.msk.f32.mxu0 %vm2960_vm0, %v2961_v6  ;;  %v108_v12 = vpop.permute.xlu0 %107 }
  0xaa   :  { %vm129_vm8 = vcmp.eq.s32.totalorder %v108_v12, %v3111_v34 }
  0xab   :  { %v150_v14 = vsel %vm129_vm8, 1.0, %v2961_v6 }
  0xac   :  { %2603 = vmatmul.mubr.msk.f32.gmra.mrb[20].mxu0 %vm157_vm1, %v140_v57 }
  0xad   :  { %2605 = vmatprep.mubr.msk.f32.mxu0 %vm2960_vm0, %v2961_v6 }
  0xb0   :  { %2606 = vmatmul.mubr.msk.f32.gmra.mrb[22].mxu0 %vm157_vm1, %v141_v59 }
  0xb1   :  { %2608 = vmatprep.mubr.msk.f32.mxu0 %vm2960_vm0, %v2961_v6 }
  0xb4   :  { %2609 = vmatmul.mubr.msk.f32.gmra.mrb[24].mxu0 %vm157_vm1, %v142_v61 }
  0xb5   :  { %2611 = vmatprep.mubr.msk.f32.mxu0 %vm2960_vm0, %v2961_v6 }
  0xb8   :  { %2612 = vmatmul.mubr.msk.f32.gmra.mrb[26].mxu0 %vm157_vm1, %v143_v63 }
  0xb9   :  { %2614 = vmatprep.mubr.msk.f32.mxu0 %vm2960_vm0, %v2961_v6 }
  0xbc   :  { %2615 = vmatmul.mubr.msk.f32.gmra.mrb[28].mxu0 %vm157_vm1, %v144_v1 }
  0xbd   :  { %2617 = vmatprep.mubr.msk.f32.mxu0 %vm2960_vm0, %v2961_v6 }
  0xc0   :  { %2618 = vmatmul.mubr.msk.f32.gmra.mrb[30].mxu0 %vm157_vm1, %v145_v3 }
  0xc1   :  { %2620 = vmatprep.mubr.msk.f32.mxu0 %vm2960_vm0, %v2961_v6 }
  0xc4   :  { %2621 = vmatmul.mubr.msk.f32.gmra.mrb[32].mxu0 %vm157_vm1, %v146_v7 }
  0xc5   :  { %2623 = vmatprep.mubr.msk.f32.mxu0 %vm2960_vm0, %v2961_v6 }
  0xc8   :  { %2624 = vmatmul.mubr.msk.f32.gmra.mrb[34].mxu0 %vm157_vm1, %v147_v9 }
  0xc9   :  { %2626 = vmatprep.mubr.msk.f32.mxu0 %vm2960_vm0, %v2961_v6 }
  0xcc   :  { %2627 = vmatmul.mubr.msk.f32.gmra.mrb[36].mxu0 %vm157_vm1, %v148_v11 }
  0xcd   :  { %2629 = vmatprep.mubr.msk.f32.mxu0 %vm2960_vm0, %v2961_v6 }
  0xd0   :  { %2630 = vmatmul.mubr.msk.f32.gmra.mrb[38].mxu0 %vm157_vm1, %v149_v13 }
  0xd1   :  { %2632 = vmatprep.mubr.msk.f32.mxu0 %vm2960_vm0, %v2961_v6 }
  0xd4   :  { %2633 = vmatmul.mubr.msk.f32.gmra.mrb[40].mxu0 %vm157_vm1, %v150_v14  ;;  %vm873_vm1 = vcmask 1043456  }
 0x157   :  { %v287_v16 = vpop.f32.mrb[0].mxu0 }
 0x158   :  { %v2574_v17 = vpop.f32.mrb[1].mxu0  ;;  %2638 = vmatmul.mubr.msk.f32.vlgmr.msra.gmra.mrb[0].mxu1 %vm391_vm9, %v287_v16 }
 0x159   :  { %2640 = vmatprep.mubr.msk.f32.mxu1 %vm2960_vm0, %v2961_v6 }
 0x15b   :  { %v292_v18 = vpop.f32.mrb[2].mxu0 }
 0x15c   :  { %v2577_v19 = vpop.f32.mrb[3].mxu0  ;;  %2641 = vmatmul.mubr.msk.f32.gmra.mrb[2].mxu1 %vm391_vm9, %v292_v18 }
 0x15d   :  { %2643 = vmatprep.mubr.msk.f32.mxu1 %vm2960_vm0, %v2961_v6 }
 0x15f   :  { %v297_v20 = vpop.f32.mrb[4].mxu0 }
 0x160   :  { %v2580_v21 = vpop.f32.mrb[5].mxu0  ;;  %2644 = vmatmul.mubr.msk.f32.gmra.mrb[4].mxu1 %vm391_vm9, %v297_v20 }
 0x161   :  { %2646 = vmatprep.mubr.msk.f32.mxu1 %vm2960_vm0, %v2961_v6 }
 0x163   :  { %v302_v22 = vpop.f32.mrb[6].mxu0 }
 0x164   :  { %v2583_v23 = vpop.f32.mrb[7].mxu0  ;;  %2647 = vmatmul.mubr.msk.f32.gmra.mrb[6].mxu1 %vm391_vm9, %v302_v22 }
 0x165   :  { %2649 = vmatprep.mubr.msk.f32.mxu1 %vm2960_vm0, %v2961_v6 }
 0x167   :  { %v307_v24 = vpop.f32.mrb[8].mxu0 }
 0x168   :  { %v2586_v25 = vpop.f32.mrb[9].mxu0  ;;  %2650 = vmatmul.mubr.msk.f32.gmra.mrb[8].mxu1 %vm391_vm9, %v307_v24 }
 0x169   :  { %2652 = vmatprep.mubr.msk.f32.mxu1 %vm2960_vm0, %v2961_v6 }
 0x16b   :  { %v312_v26 = vpop.f32.mrb[10].mxu0 }
 0x16c   :  { %v2589_v27 = vpop.f32.mrb[11].mxu0  ;;  %2653 = vmatmul.mubr.msk.f32.gmra.mrb[10].mxu1 %vm391_vm9, %v312_v26 }
 0x16d   :  { %2655 = vmatprep.mubr.msk.f32.mxu1 %vm2960_vm0, %v2961_v6 }
 0x16f   :  { %v317_v28 = vpop.f32.mrb[12].mxu0 }
 0x170   :  { %v2592_v29 = vpop.f32.mrb[13].mxu0  ;;  %2656 = vmatmul.mubr.msk.f32.gmra.mrb[12].mxu1 %vm391_vm9, %v317_v28 }
 0x171   :  { %2658 = vmatprep.mubr.msk.f32.mxu1 %vm2960_vm0, %v2961_v6 }
 0x173   :  { %v322_v30 = vpop.f32.mrb[14].mxu0 }
 0x174   :  { %v2595_v31 = vpop.f32.mrb[15].mxu0  ;;  %2659 = vmatmul.mubr.msk.f32.gmra.mrb[14].mxu1 %vm391_vm9, %v322_v30 }
 0x175   :  { %2661 = vmatprep.mubr.msk.f32.mxu1 %vm2960_vm0, %v2961_v6 }
 0x177   :  { %v327_v32 = vpop.f32.mrb[16].mxu0 }
 0x178   :  { %v2598_v34 = vpop.f32.mrb[17].mxu0  ;;  %2662 = vmatmul.mubr.msk.f32.gmra.mrb[16].mxu1 %vm391_vm9, %v327_v32 }
 0x179   :  { %2664 = vmatprep.mubr.msk.f32.mxu1 %vm2960_vm0, %v2961_v6 }
 0x17b   :  { %v332_v35 = vpop.f32.mrb[18].mxu0 }
 0x17c   :  { %v2601_v36 = vpop.f32.mrb[19].mxu0  ;;  %2665 = vmatmul.mubr.msk.f32.gmra.mrb[18].mxu1 %vm391_vm9, %v332_v35 }
 0x17d   :  { %2667 = vmatprep.mubr.msk.f32.mxu1 %vm2960_vm0, %v2961_v6 }
 0x17f   :  { %v337_v37 = vpop.f32.mrb[20].mxu0 }
 0x180   :  { %v2604_v38 = vpop.f32.mrb[21].mxu0  ;;  %2668 = vmatmul.mubr.msk.f32.gmra.mrb[20].mxu1 %vm391_vm9, %v337_v37 }
 0x181   :  { %2670 = vmatprep.mubr.msk.f32.mxu1 %vm2960_vm0, %v2961_v6 }
 0x183   :  { %v342_v39 = vpop.f32.mrb[22].mxu0 }
 0x184   :  { %v2607_v40 = vpop.f32.mrb[23].mxu0  ;;  %2671 = vmatmul.mubr.msk.f32.gmra.mrb[22].mxu1 %vm391_vm9, %v342_v39 }
 0x185   :  { %2673 = vmatprep.mubr.msk.f32.mxu1 %vm2960_vm0, %v2961_v6 }
 0x187   :  { %v347_v41 = vpop.f32.mrb[24].mxu0 }
 0x188   :  { %v2610_v42 = vpop.f32.mrb[25].mxu0  ;;  %2674 = vmatmul.mubr.msk.f32.gmra.mrb[24].mxu1 %vm391_vm9, %v347_v41 }
 0x189   :  { %2676 = vmatprep.mubr.msk.f32.mxu1 %vm2960_vm0, %v2961_v6 }
 0x18b   :  { %v352_v43 = vpop.f32.mrb[26].mxu0 }
 0x18c   :  { %v2613_v44 = vpop.f32.mrb[27].mxu0  ;;  %2677 = vmatmul.mubr.msk.f32.gmra.mrb[26].mxu1 %vm391_vm9, %v352_v43 }
 0x18d   :  { %2679 = vmatprep.mubr.msk.f32.mxu1 %vm2960_vm0, %v2961_v6 }
 0x18f   :  { %v357_v45 = vpop.f32.mrb[28].mxu0 }
 0x190   :  { %v2616_v46 = vpop.f32.mrb[29].mxu0  ;;  %2680 = vmatmul.mubr.msk.f32.gmra.mrb[28].mxu1 %vm391_vm9, %v357_v45 }
 0x191   :  { %2682 = vmatprep.mubr.msk.f32.mxu1 %vm2960_vm0, %v2961_v6 }
 0x193   :  { %v362_v47 = vpop.f32.mrb[30].mxu0 }
 0x194   :  { %v2619_v48 = vpop.f32.mrb[31].mxu0  ;;  %2683 = vmatmul.mubr.msk.f32.gmra.mrb[30].mxu1 %vm391_vm9, %v362_v47 }
 0x195   :  { %2685 = vmatprep.mubr.msk.f32.mxu1 %vm2960_vm0, %v2961_v6 }
 0x197   :  { %v367_v49 = vpop.f32.mrb[32].mxu0 }
 0x198   :  { %v2622_v50 = vpop.f32.mrb[33].mxu0  ;;  %2686 = vmatmul.mubr.msk.f32.gmra.mrb[32].mxu1 %vm391_vm9, %v367_v49 }
 0x199   :  { %2688 = vmatprep.mubr.msk.f32.mxu1 %vm2960_vm0, %v2961_v6 }
 0x19b   :  { %v372_v51 = vpop.f32.mrb[34].mxu0 }
 0x19c   :  { %v2625_v52 = vpop.f32.mrb[35].mxu0  ;;  %2689 = vmatmul.mubr.msk.f32.gmra.mrb[34].mxu1 %vm391_vm9, %v372_v51 }
 0x19d   :  { %2691 = vmatprep.mubr.msk.f32.mxu1 %vm2960_vm0, %v2961_v6 }
 0x19f   :  { %v377_v53 = vpop.f32.mrb[36].mxu0 }
 0x1a0   :  { %v2628_v54 = vpop.f32.mrb[37].mxu0  ;;  %2692 = vmatmul.mubr.msk.f32.gmra.mrb[36].mxu1 %vm391_vm9, %v377_v53 }
 0x1a1   :  { %2694 = vmatprep.mubr.msk.f32.mxu1 %vm2960_vm0, %v2961_v6 }
 0x1a3   :  { %v382_v55 = vpop.f32.mrb[38].mxu0 }
 0x1a4   :  { %v2631_v56 = vpop.f32.mrb[39].mxu0  ;;  %2695 = vmatmul.mubr.msk.f32.gmra.mrb[38].mxu1 %vm391_vm9, %v382_v55 }
 0x1a5   :  { %2697 = vmatprep.mubr.msk.f32.mxu1 %vm2960_vm0, %v2961_v6 }
 0x1a7   :  { %v387_v57 = vpop.f32.mrb[40].mxu0 }
 0x1a8   :  { %v2634_v58 = vpop.f32.mrb[41].mxu0  ;;  %2698 = vmatmul.mubr.msk.f32.gmra.mrb[40].mxu1 %vm391_vm9, %v387_v57 }
 0x22b   :  { %v3283_v59 = vpop.f32.mrb[0].mxu1 }
 0x22c   :  { %v2639_v60 = vpop.f32.mrb[1].mxu1 }
 0x22f   :  { %v3285_v61 = vpop.f32.mrb[2].mxu1 }
 0x230   :  { %v2642_v62 = vpop.f32.mrb[3].mxu1  ;;  %v1081_v2 = vrot.slane %v3285_v61, 4 }
 0x233   :  { %v3287_v63 = vpop.f32.mrb[4].mxu1 }
 0x234   :  { %v2645_v0 = vpop.f32.mrb[5].mxu1  ;;  %v1082_v1 = vrot.slane %v3287_v63, 4 }
 0x236   :  { %v3294_v3 = vsel %vm873_vm1, %v1081_v2, %v1082_v1 }
 0x237   :  { %v3296_v4 = vpop.f32.mrb[6].mxu1 }
 0x238   :  { %v2648_v7 = vpop.f32.mrb[7].mxu1  ;;  %v3299_v8 = vrot.slane %v3296_v4, 4 }
 0x23a   :  { %877 = vrot.lane.b32.xlu1 %v3299_v8, %s2962_s22 }
 0x23b   :  { %v3303_v9 = vpop.f32.mrb[8].mxu1 }
 0x23c   :  { %v2651_v10 = vpop.f32.mrb[9].mxu1  ;;  %v875_v11 = vrot.slane %v3303_v9, 4 }
 0x23e   :  { %892 = vrot.lane.b32.xlu1 %v3303_v9, %s2962_s22  ;;  %v3310_v12 = vsel %vm873_vm1, %v3299_v8, %v875_v11 }
 0x23f   :  { %879 = vrot.lane.b32.xlu0 %v3310_v12, %s2962_s22  ;;  %v3314_v13 = vpop.f32.mrb[10].mxu1 }
 0x240   :  { %v2654_v14 = vpop.f32.mrb[11].mxu1 }
 0x243   :  { %894 = vrot.lane.b32.xlu0 %v3314_v13, %s2962_s22  ;;  %v3318_v16 = vpop.f32.mrb[12].mxu1 }
 0x244   :  { %v2657_v17 = vpop.f32.mrb[13].mxu1  ;;  %v3321_v18 = vrot.slane %v3318_v16, 4 }
 0x246   :  { %911 = vrot.lane.b32.xlu1 %v3321_v18, %s2962_s22 }
 0x247   :  { %v3325_v19 = vpop.f32.mrb[14].mxu1 }
 0x248   :  { %v2660_v20 = vpop.f32.mrb[15].mxu1  ;;  %v909_v21 = vrot.slane %v3325_v19, 4 }
 0x24a   :  { %926 = vrot.lane.b32.xlu1 %v3325_v19, %s2962_s22  ;;  %v3332_v22 = vsel %vm873_vm1, %v3321_v18, %v909_v21 }
 0x24b   :  { %913 = vrot.lane.b32.xlu0 %v3332_v22, %s2962_s22  ;;  %v3336_v23 = vpop.f32.mrb[16].mxu1 }
 0x24c   :  { %v2663_v24 = vpop.f32.mrb[17].mxu1 }
 0x24f   :  { %928 = vrot.lane.b32.xlu0 %v3336_v23, %s2962_s22  ;;  %v3340_v25 = vpop.f32.mrb[18].mxu1 }
 0x250   :  { %631 = vrot.lane.b32.xlu1 %v3340_v25, %s2962_s22  ;;  %v2666_v26 = vpop.f32.mrb[19].mxu1 }
 0x253   :  { %v3344_v27 = vpop.f32.mrb[20].mxu1 }
 0x254   :  { %633 = vrot.lane.b32.xlu1 %v3344_v27, %s2962_s22  ;;  %v2669_v28 = vpop.f32.mrb[21].mxu1 }
 0x257   :  { %v3348_v29 = vpop.f32.mrb[22].mxu1 }
 0x258   :  { %635 = vrot.lane.b32.xlu1 %v3348_v29, %s2962_s22  ;;  %v2672_v30 = vpop.f32.mrb[23].mxu1 }
 0x25b   :  { %v3352_v31 = vpop.f32.mrb[24].mxu1 }
 0x25c   :  { %637 = vrot.lane.b32.xlu1 %v3352_v31, %s2962_s22  ;;  %v2675_v32 = vpop.f32.mrb[25].mxu1 }
 0x25f   :  { %v3356_v34 = vpop.f32.mrb[26].mxu1 }
 0x260   :  { %639 = vrot.lane.b32.xlu1 %v3356_v34, %s2962_s22  ;;  %v2678_v35 = vpop.f32.mrb[27].mxu1 }
 0x263   :  { %v3360_v36 = vpop.f32.mrb[28].mxu1 }
 0x264   :  { %641 = vrot.lane.b32.xlu1 %v3360_v36, %s2962_s22  ;;  %v2681_v37 = vpop.f32.mrb[29].mxu1 }
 0x267   :  { %v3364_v38 = vpop.f32.mrb[30].mxu1 }
 0x268   :  { %679 = vrot.lane.b32.xlu0 %v3364_v38, %s2962_s22  ;;  %v2684_v39 = vpop.f32.mrb[31].mxu1 }
 0x26b   :  { %v3368_v40 = vpop.f32.mrb[32].mxu1 }
 0x26c   :  { %681 = vrot.lane.b32.xlu0 %v3368_v40, %s2962_s22  ;;  %v2687_v41 = vpop.f32.mrb[33].mxu1 }
 0x26f   :  { %v3372_v42 = vpop.f32.mrb[34].mxu1 }
 0x270   :  { %683 = vrot.lane.b32.xlu0 %v3372_v42, %s2962_s22  ;;  %v2690_v43 = vpop.f32.mrb[35].mxu1 }
 0x273   :  { %v3376_v44 = vpop.f32.mrb[36].mxu1 }
 0x274   :  { %685 = vrot.lane.b32.xlu0 %v3376_v44, %s2962_s22  ;;  %v2693_v45 = vpop.f32.mrb[37].mxu1 }
 0x277   :  { %v3380_v46 = vpop.f32.mrb[38].mxu1 }
 0x278   :  { %687 = vrot.lane.b32.xlu0 %v3380_v46, %s2962_s22  ;;  %v2696_v47 = vpop.f32.mrb[39].mxu1 }
 0x27b   :  { %v3384_v48 = vpop.f32.mrb[40].mxu1 }
 0x27c   :  { %689 = vrot.lane.b32.xlu0 %v3384_v48, %s2962_s22  ;;  %v2699_v49 = vpop.f32.mrb[41].mxu1 }
 0x2ac   :  { %v878_v50 = vpop.permute.xlu1 %877 }
 0x2ad   :  { %v883_v54 = vadd.f32 %v878_v50, %v3285_v61 }
 0x2af   :  { %v887_v58 = vmul.f32 0.01, %v883_v54  ;;  %vm885_vm11 = vcmp.gt.f32.partialorder %v883_v54, 0.0 }
 0x2b0   :  { %v893_v51 = vpop.permute.xlu1 %892 }
 0x2b1   :  { %v880_v52 = vpop.permute.xlu0 %879  ;;  %v898_v53 = vadd.f32 %v893_v51, %v3285_v61  ;;  %v889_v11 = vsel %vm885_vm11, %v883_v54, %v887_v58 }
 0x2b2   :  { %v884_v2 = vadd.f32 %v880_v52, %v3287_v63 }
 0x2b3   :  { %v902_v56 = vmul.f32 0.01, %v898_v53  ;;  %vm900_vm10 = vcmp.gt.f32.partialorder %v898_v53, 0.0 }
 0x2b4   :  { %v888_v28 = vmul.f32 0.01, %v884_v2  ;;  %vm886_vm15 = vcmp.gt.f32.partialorder %v884_v2, 0.0 }
 0x2b5   :  { %v895_v55 = vpop.permute.xlu0 %894  ;;  %v904_v0 = vsel %vm900_vm10, %v898_v53, %v902_v56 }
 0x2b6   :  { %v899_v60 = vadd.f32 %v895_v55, %v3287_v63  ;;  %v940_v24 = vmax.f32 %v889_v11, %v904_v0  ;;  %v890_v47 = vsel %vm886_vm15, %v884_v2, %v888_v28 }
 0x2b8   :  { %v912_v57 = vpop.permute.xlu1 %911  ;;  %v903_v14 = vmul.f32 0.01, %v899_v60  ;;  %vm901_vm13 = vcmp.gt.f32.partialorder %v899_v60, 0.0 }
 0x2b9   :  { %v917_v62 = vadd.f32 %v912_v57, %v3285_v61 }
 0x2ba   :  { %v905_v37 = vsel %vm901_vm13, %v899_v60, %v903_v14 }
 0x2bb   :  { %vm919_vm12 = vcmp.gt.f32.partialorder %v917_v62, 0.0  ;;  %v921_v7 = vmul.f32 0.01, %v917_v62  ;;  %v941_v50 = vmax.f32 %v890_v47, %v905_v37 }
 0x2bc   :  { %v927_v10 = vpop.permute.xlu1 %926 }
 0x2bd   :  { %v923_v17 = vsel %vm919_vm12, %v917_v62, %v921_v7  ;;  %v932_v20 = vadd.f32 %v927_v10, %v3285_v61  ;;  %v914_v21 = vpop.permute.xlu0 %913 }
 0x2be   :  { %v918_v26 = vadd.f32 %v914_v21, %v3287_v63  ;;  %v942_v32 = vmax.f32 %v940_v24, %v923_v17 }
 0x2bf   :  { %vm934_vm14 = vcmp.gt.f32.partialorder %v932_v20, 0.0  ;;  %v936_v30 = vmul.f32 0.01, %v932_v20 }
 0x2c0   :  { %vm920_vm2 = vcmp.gt.f32.partialorder %v918_v26, 0.0  ;;  %v922_v35 = vmul.f32 0.01, %v918_v26 }
 0x2c1   :  { %v938_v39 = vsel %vm934_vm14, %v932_v20, %v936_v30  ;;  %v929_v41 = vpop.permute.xlu0 %928 }
 0x2c2   :  { %v944_v43 = vmax.f32 %v942_v32, %v938_v39  ;;  %v933_v45 = vadd.f32 %v929_v41, %v3287_v63  ;;  %v924_v49 = vsel %vm920_vm2, %v918_v26, %v922_v35  ;;  %v632_v10 = vpop.permute.xlu1 %631 }
 0x2c3   :  { %v943_v57 = vmax.f32 %v941_v50, %v924_v49  ;;  %v649_v41 = vadd.f32 %v632_v10, %v3296_v4 }
 0x2c4   :  { %v946_v51 = vsub.f32 %v889_v11, %v944_v43  ;;  %v952_v52 = vsub.f32 %v904_v0, %v944_v43  ;;  %v958_v53 = vsub.f32 %v923_v17, %v944_v43  ;;  %vm935_vm3 = vcmp.gt.f32.partialorder %v933_v45, 0.0 }
 0x2c5   :  { %v937_v54 = vmul.f32 0.01, %v933_v45  ;;  %v964_v56 = vsub.f32 %v938_v39, %v944_v43  ;;  %vm655_vm4 = vcmp.gt.f32.partialorder %v649_v41, 0.0 }
 0x2c6   :  { %v948_v55 = vmul.f32 1.442695, %v946_v51  ;;  %v954_v62 = vmul.f32 1.442695, %v952_v52  ;;  %v960_v60 = vmul.f32 1.442695, %v958_v53  ;;  %v634_v26 = vpop.permute.xlu1 %633 }
 0x2c7   :  { %v939_v58 = vsel %vm935_vm3, %v933_v45, %v937_v54  ;;  %v966_v14 = vmul.f32 1.442695, %v964_v56  ;;  %v661_v52 = vmul.f32 0.01, %v649_v41  ;;  %v650_v53 = vadd.f32 %v634_v26, %v3303_v9 }
 0x2c8   :  { %v945_v7 = vmax.f32 %v943_v57, %v939_v58  ;;  %2831 = vpow2.f32 %v948_v55 }
 0x2c9   :  { %2833 = vpow2.f32 %v954_v62  ;;  %vm656_vm6 = vcmp.gt.f32.partialorder %v650_v53, 0.0 }
 0x2ca   :  { %v947_v20 = vsub.f32 %v890_v47, %v945_v7  ;;  %v953_v21 = vsub.f32 %v905_v37, %v945_v7  ;;  %v959_v2 = vsub.f32 %v924_v49, %v945_v7  ;;  %2835 = vpow2.f32 %v960_v60  ;;  %v636_v35 = vpop.permute.xlu1 %635 }
 0x2cb   :  { %v965_v0 = vsub.f32 %v939_v58, %v945_v7  ;;  %2837 = vpow2.f32 %v966_v14  ;;  %v651_v62 = vadd.f32 %v636_v35, %v3314_v13  ;;  %v667_v14 = vsel %vm655_vm4, %v649_v41, %v661_v52 }
 0x2cc   :  { %v950_v24 = vmul.f32 1.442695, %v947_v20  ;;  %v956_v11 = vmul.f32 1.442695, %v953_v21  ;;  %v962_v17 = vmul.f32 1.442695, %v959_v2 }
 0x2cd   :  { %v968_v28 = vmul.f32 1.442695, %v965_v0  ;;  %v662_v20 = vmul.f32 0.01, %v650_v53  ;;  %vm657_vm8 = vcmp.gt.f32.partialorder %v651_v62, 0.0 }
 0x2ce   :  { %2839 = vpow2.f32 %v950_v24  ;;  %v638_v54 = vpop.permute.xlu1 %637 }
 0x2cf   :  { %2841 = vpow2.f32 %v956_v11  ;;  %v652_v24 = vadd.f32 %v638_v54, %v3318_v16 }
 0x2d0   :  { %2843 = vpow2.f32 %v962_v17 }
 0x2d1   :  { %2845 = vpow2.f32 %v968_v28  ;;  %v663_v28 = vmul.f32 0.01, %v651_v62  ;;  %v664_v52 = vmul.f32 0.01, %v652_v24  ;;  %vm658_vm10 = vcmp.gt.f32.partialorder %v652_v24, 0.0 }
 0x2d2   :  { %v3396_v30 = vpop.eup %2831  ;;  %v640_v17 = vpop.permute.xlu1 %639 }
 0x2d3   :  { %v3398_v32 = vpop.eup %2833 }
 0x2d4   :  { %v970_v37 = vadd.f32 %v3398_v32, %v3396_v30  ;;  %v3402_v39 = vpop.eup %2835 }
 0x2d5   :  { %v3405_v43 = vpop.eup %2837 }
 0x2d6   :  { %v972_v45 = vadd.f32 %v3402_v39, %v970_v37 }
 0x2d8   :  { %v3408_v47 = vpop.eup %2839  ;;  %v974_v50 = vadd.f32 %v3405_v43, %v972_v45 }
 0x2d9   :  { %v3411_v51 = vpop.eup %2841 }
 0x2da   :  { %v680_v49 = vpop.permute.xlu0 %679  ;;  %2847 = vrcp.f32 %v974_v50  ;;  %v971_v56 = vadd.f32 %v3411_v51, %v3408_v47  ;;  %v3417_v57 = vpop.eup %2843 }
 0x2db   :  { %v697_v55 = vadd.f32 %v680_v49, %v3296_v4  ;;  %v3421_v10 = vpop.eup %2845  ;;  %v668_v49 = vsel %vm656_vm6, %v650_v53, %v662_v20  ;;  %v642_v20 = vpop.permute.xlu1 %641 }
 0x2dc   :  { %v973_v60 = vadd.f32 %v3417_v57, %v971_v56 }
 0x2dd   :  { %vm703_vm5 = vcmp.gt.f32.partialorder %v697_v55, 0.0  ;;  %v709_v58 = vmul.f32 0.01, %v697_v55 }
 0x2de   :  { %v682_v7 = vpop.permute.xlu0 %681  ;;  %v975_v11 = vadd.f32 %v3421_v10, %v973_v60 }
 0x2df   :  { %v715_v21 = vsel %vm703_vm5, %v697_v55, %v709_v58  ;;  %v698_v2 = vadd.f32 %v682_v7, %v3303_v9  ;;  %v653_v58 = vadd.f32 %v640_v17, %v3325_v19 }
 0x2e0   :  { %v721_v0 = vmax.f32 %v667_v14, %v715_v21  ;;  %2849 = vrcp.f32 %v975_v11 }
 0x2e1   :  { %vm704_vm7 = vcmp.gt.f32.partialorder %v698_v2, 0.0  ;;  %v710_v26 = vmul.f32 0.01, %v698_v2  ;;  %vm659_vm12 = vcmp.gt.f32.partialorder %v653_v58, 0.0  ;;  %v665_v33 = vmul.f32 0.01, %v653_v58 }
 0x2e2   :  { %v727_v35 = vsub.f32 %v667_v14, %v721_v0  ;;  %v745_v37 = vsub.f32 %v715_v21, %v721_v0  ;;  %v684_v45 = vpop.permute.xlu0 %683  ;;  %v669_v14 = vsel %vm657_vm8, %v651_v62, %v663_v28  ;;  %v654_v28 = vadd.f32 %v642_v20, %v3336_v23 }
 0x2e3   :  { %v716_v41 = vsel %vm704_vm7, %v698_v2, %v710_v26  ;;  %v699_v50 = vadd.f32 %v684_v45, %v3314_v13 }
 0x2e4   :  { %v733_v55 = vmul.f32 1.442695, %v727_v35  ;;  %v751_v56 = vmul.f32 1.442695, %v745_v37  ;;  %v722_v54 = vmax.f32 %v668_v49, %v716_v41  ;;  %v3428_v60 = vpop.eup %2847  ;;  %v670_v35 = vsel %vm658_vm10, %v652_v24, %v664_v52 }
 0x2e5   :  { %vm705_vm11 = vcmp.gt.f32.partialorder %v699_v50, 0.0  ;;  %v711_v7 = vmul.f32 0.01, %v699_v50  ;;  %v982_v11 = vmul.f32 %v3428_v60, %v3398_v32  ;;  %v986_v32 = vmul.f32 %v3428_v60, %v3405_v43 }
 0x2e6   :  { %2851 = vpow2.f32 %v733_v55  ;;  %v728_v21 = vsub.f32 %v668_v49, %v722_v54  ;;  %v746_v0 = vsub.f32 %v716_v41, %v722_v54  ;;  %v686_v53 = vpop.permute.xlu0 %685  ;;  %vm660_vm15 = vcmp.gt.f32.partialorder %v654_v28, 0.0 }
 0x2e7   :  { %2853 = vpow2.f32 %v751_v56  ;;  %v717_v2 = vsel %vm705_vm11, %v699_v50, %v711_v7  ;;  %v700_v26 = vadd.f32 %v686_v53, %v3318_v16  ;;  %1008 = vperm.xlu1 %2825, %v982_v11   ;;  %v666_v53 = vmul.f32 0.01, %v654_v28 }
 0x2e8   :  { %v735_v37 = vmul.f32 1.442695, %v728_v21  ;;  %v753_v17 = vmul.f32 1.442695, %v746_v0  ;;  %v723_v45 = vmax.f32 %v669_v14, %v717_v2  ;;  %v671_v21 = vsel %vm659_vm12, %v653_v58, %v665_v33 }
 0x2e9   :  { %vm706_vm13 = vcmp.gt.f32.partialorder %v700_v26, 0.0  ;;  %v712_v62 = vmul.f32 0.01, %v700_v26  ;;  %vm1984_vm12 = vcmask 130048  }
 0x2ea   :  { %2855 = vpow2.f32 %v735_v37  ;;  %v729_v49 = vsub.f32 %v669_v14, %v723_v45  ;;  %v747_v41 = vsub.f32 %v717_v2, %v723_v45  ;;  %v688_v50 = vpop.permute.xlu0 %687  ;;  %v3437_v52 = vpop.eup %2849 }
 0x2eb   :  { %2857 = vpow2.f32 %v753_v17  ;;  %v718_v55 = vsel %vm706_vm13, %v700_v26, %v712_v62  ;;  %v701_v24 = vadd.f32 %v688_v50, %v3325_v19  ;;  %1050 = vperm.xlu1 %2825, %v986_v32   ;;  %v983_v14 = vmul.f32 %v3437_v52, %v3411_v51 }
 0x2ec   :  { %v737_v56 = vmul.f32 1.442695, %v729_v49  ;;  %v755_v54 = vmul.f32 1.442695, %v747_v41  ;;  %v724_v7 = vmax.f32 %v670_v35, %v718_v55  ;;  %v980_v26 = vmul.f32 %v3428_v60, %v3396_v30 }
 0x2ed   :  { %vm707_vm14 = vcmp.gt.f32.partialorder %v701_v24, 0.0  ;;  %v713_v0 = vmul.f32 0.01, %v701_v24  ;;  %1013 = vperm.xlu0 %2824, %v983_v14   ;;  %v984_v32 = vmul.f32 %v3428_v60, %v3402_v39  ;;  %vm2094_vm13 = vcmask 195584  }
 0x2ee   :  { %2859 = vpow2.f32 %v737_v56  ;;  %v730_v20 = vsub.f32 %v670_v35, %v724_v7  ;;  %v748_v2 = vsub.f32 %v718_v55, %v724_v7  ;;  %v690_v43 = vpop.permute.xlu0 %689  ;;  %v987_v35 = vmul.f32 %v3437_v52, %v3421_v10 }
 0x2ef   :  { %2861 = vpow2.f32 %v755_v54  ;;  %v719_v11 = vsel %vm707_vm14, %v701_v24, %v713_v0  ;;  %v702_v37 = vadd.f32 %v690_v43, %v3336_v23  ;;  %990 = vperm.xlu1 %2825, %v980_v26   ;;  %v672_v55 = vsel %vm660_vm15, %v654_v28, %v666_v53 }
 0x2f0   :  { %v2852_v33 = vpop.eup %2851  ;;  %v739_v58 = vmul.f32 1.442695, %v730_v20  ;;  %v757_v17 = vmul.f32 1.442695, %v748_v2  ;;  %v725_v45 = vmax.f32 %v671_v21, %v719_v11  ;;  %vm1751_vm14 = vcmask 23552  }
 0x2f1   :  { %v2854_v62 = vpop.eup %2853  ;;  %vm708_vm2 = vcmp.gt.f32.partialorder %v702_v37, 0.0  ;;  %v714_v51 = vmul.f32 0.01, %v702_v37  ;;  %1055 = vperm.xlu0 %2824, %v987_v35   ;;  %vm1754_vm15 = vcmask 31744  }
 0x2f2   :  { %2863 = vpow2.f32 %v739_v58  ;;  %v731_v49 = vsub.f32 %v671_v21, %v725_v45  ;;  %v749_v41 = vsub.f32 %v719_v11, %v725_v45  ;;  %v763_v50 = vadd.f32 %v2854_v62, %v2852_v33 }
 0x2f3   :  { %2865 = vpow2.f32 %v757_v17  ;;  %v720_v30 = vsel %vm708_vm2, %v702_v37, %v714_v51  ;;  %1030 = vperm.xlu1 %2825, %v984_v32   ;;  %vm1757_vm2 = vcmask 39936  }
 0x2f4   :  { %v2856_v24 = vpop.eup %2855  ;;  %v741_v56 = vmul.f32 1.442695, %v731_v49  ;;  %v759_v54 = vmul.f32 1.442695, %v749_v41  ;;  %v726_v7 = vmax.f32 %v672_v55, %v720_v30  ;;  %2867 = vrcp.f32 %v763_v50 }
 0x2f5   :  { %v2858_v0 = vpop.eup %2857  ;;  %1000 = vrot.lane.b32.xlu0 %v3310_v12, %s2963_s23  ;;  %v981_v12 = vmul.f32 %v3437_v52, %v3408_v47 }
 0x2f6   :  { %2869 = vpow2.f32 %v741_v56  ;;  %v732_v10 = vsub.f32 %v672_v55, %v726_v7  ;;  %v750_v14 = vsub.f32 %v720_v30, %v726_v7  ;;  %v764_v21 = vadd.f32 %v2858_v0, %v2856_v24 }
 0x2f7   :  { %2871 = vpow2.f32 %v759_v54  ;;  %998 = vrot.lane.b32.xlu1 %v3299_v8, %s2963_s23 }
 0x2f8   :  { %v2860_v28 = vpop.eup %2859  ;;  %v743_v53 = vmul.f32 1.442695, %v732_v10  ;;  %v761_v20 = vmul.f32 1.442695, %v750_v14  ;;  %2873 = vrcp.f32 %v764_v21 }
 0x2f9   :  { %v2862_v39 = vpop.eup %2861  ;;  %1040 = vrot.lane.b32.xlu0 %v3332_v22, %s2963_s23  ;;  %v985_v22 = vmul.f32 %v3437_v52, %v3417_v57 }
 0x2fa   :  { %2875 = vpow2.f32 %v743_v53  ;;  %v765_v60 = vadd.f32 %v2862_v39, %v2860_v28 }
 0x2fb   :  { %2877 = vpow2.f32 %v761_v20  ;;  %1038 = vrot.lane.b32.xlu1 %v3321_v18, %s2963_s23 }
 0x2fc   :  { %v2864_v2 = vpop.eup %2863  ;;  %2879 = vrcp.f32 %v765_v60 }
 0x2fd   :  { %v2866_v43 = vpop.eup %2865  ;;  %995 = vperm.xlu0 %2824, %v981_v12  }
 0x2fe   :  { %v2868_v11 = vpop.eup %2867  ;;  %v766_v26 = vadd.f32 %v2866_v43, %v2864_v2 }
 0x2ff   :  { %v3459_v37 = vmul.f32 %v2868_v11, %v2852_v33  ;;  %v3466_v35 = vmul.f32 %v2868_v11, %v2854_v62 }
 0x300   :  { %v2870_v8 = vpop.eup %2869  ;;  %2881 = vrcp.f32 %v766_v26 }
 0x301   :  { %v2872_v58 = vpop.eup %2871  ;;  %795 = vperm.xlu1 %2825, %v3459_v37   ;;  %1035 = vperm.xlu0 %2824, %v985_v22  }
 0x302   :  { %v2874_v17 = vpop.eup %2873  ;;  %v767_v45 = vadd.f32 %v2872_v58, %v2870_v8 }
 0x303   :  { %v3464_v18 = vmul.f32 %v2874_v17, %v2856_v24  ;;  %v3472_v57 = vmul.f32 %v2874_v17, %v2858_v0 }
 0x304   :  { %v2876_v51 = vpop.eup %2875  ;;  %2883 = vrcp.f32 %v767_v45 }
 0x305   :  { %v2878_v47 = vpop.eup %2877  ;;  %800 = vperm.xlu1 %2825, %v3464_v18   ;;  %831 = vperm.xlu0 %2824, %v3466_v35  }
 0x306   :  { %v2880_v33 = vpop.eup %2879  ;;  %v768_v49 = vadd.f32 %v2878_v47, %v2876_v51 }
 0x307   :  { %v3470_v41 = vmul.f32 %v2880_v33, %v2860_v28  ;;  %v3478_v62 = vmul.f32 %v2880_v33, %v2862_v39 }
 0x308   :  { %2885 = vrcp.f32 %v768_v49 }
 0x309   :  { %805 = vperm.xlu1 %2825, %v3470_v41   ;;  %836 = vperm.xlu0 %2824, %v3472_v57  }
 0x30a   :  { %v2882_v52 = vpop.eup %2881 }
 0x30b   :  { %v3476_v50 = vmul.f32 %v2882_v52, %v2864_v2  ;;  %v3484_v32 = vmul.f32 %v2882_v52, %v2866_v43 }
 0x30d   :  { %810 = vperm.xlu1 %2825, %v3476_v50   ;;  %841 = vperm.xlu0 %2824, %v3478_v62  }
 0x30e   :  { %v2884_v55 = vpop.eup %2883 }
 0x30f   :  { %v3482_v30 = vmul.f32 %v2884_v55, %v2870_v8  ;;  %v3490_v54 = vmul.f32 %v2884_v55, %v2872_v58 }
 0x311   :  { %815 = vperm.xlu1 %2825, %v3482_v30   ;;  %846 = vperm.xlu0 %2824, %v3484_v32  }
 0x312   :  { %v2886_v24 = vpop.eup %2885 }
 0x313   :  { %v3488_v56 = vmul.f32 %v2886_v24, %v2876_v51  ;;  %v3494_v7 = vmul.f32 %v2886_v24, %v2878_v47 }
 0x315   :  { %820 = vperm.xlu1 %2825, %v3488_v56   ;;  %851 = vperm.xlu0 %2824, %v3490_v54  }
 0x319   :  { %856 = vperm.xlu0 %2824, %v3494_v7  }
 0x366   :  { %v1009_v0 = vpop.permute.xlu1 %1008 }
 0x367   :  { %v1016_v10 = vmul.f32 %v1009_v0, %v3303_v9 }
 0x369   :  { %1020 = vrot.lane.b32.xlu1 %v1016_v10, %s2963_s23 }
 0x36a   :  { %v1051_v14 = vpop.permute.xlu1 %1050 }
 0x36b   :  { %v1058_v21 = vmul.f32 %v1051_v14, %v3325_v19 }
 0x36c   :  { %v1014_v28 = vpop.permute.xlu0 %1013 }
 0x36d   :  { %v1017_v53 = vmul.f32 %v1014_v28, %v3314_v13  ;;  %1062 = vrot.lane.b32.xlu1 %v1058_v21, %s2963_s23 }
 0x36e   :  { %v991_v20 = vpop.permute.xlu1 %990 }
 0x36f   :  { %1022 = vrot.lane.b32.xlu0 %v1017_v53, %s2963_s23 }
 0x370   :  { %v1056_v39 = vpop.permute.xlu0 %1055 }
 0x371   :  { %v1059_v60 = vmul.f32 %v1056_v39, %v3336_v23  ;;  %1109 = vrot.lane.b32.xlu1 %v3219_v15, %s2964_s24  ;;  %s2985_s24 = smov 6  }
 0x372   :  { %v1031_v2 = vpop.permute.xlu1 %1030 }
 0x373   :  { %1064 = vrot.lane.b32.xlu0 %v1059_v60, %s2963_s23 }
 0x374   :  { %v1001_v43 = vpop.permute.xlu0 %1000 }
 0x376   :  { %v999_v12 = vpop.permute.xlu1 %998 }
 0x378   :  { %v1041_v11 = vpop.permute.xlu0 %1040 }
 0x37a   :  { %v1039_v26 = vpop.permute.xlu1 %1038 }
 0x37c   :  { %v996_v8 = vpop.permute.xlu0 %995 }
 0x380   :  { %v796_v58 = vpop.permute.xlu1 %795  ;;  %v1036_v22 = vpop.permute.xlu0 %1035 }
 0x381   :  { %v823_v51 = vmul.f32 %v796_v58, %v3340_v25 }
 0x384   :  { %v801_v17 = vpop.permute.xlu1 %800  ;;  %v832_v45 = vpop.permute.xlu0 %831 }
 0x385   :  { %v859_v47 = vmul.f32 %v832_v45, %v3364_v38  ;;  %v824_v15 = vmul.f32 %v801_v17, %v3344_v27 }
 0x387   :  { %v865_v49 = vadd.f32 %v859_v47, %v823_v51  ;;  %v1004_v47 = vmul.f32 %v999_v12, %v991_v20 }
 0x388   :  { %v806_v33 = vpop.permute.xlu1 %805  ;;  %v837_v52 = vpop.permute.xlu0 %836 }
 0x389   :  { %v860_v55 = vmul.f32 %v837_v52, %v3368_v40  ;;  %1092 = vrot.lane.b32.xlu0 %v865_v49, %s2963_s23  ;;  %v825_v14 = vmul.f32 %v806_v33, %v3348_v29  ;;  %v1044_v49 = vmul.f32 %v1039_v26, %v1031_v2 }
 0x38b   :  { %v866_v0 = vadd.f32 %v860_v55, %v824_v15  ;;  %v1005_v15 = vmul.f32 %v1001_v43, %v996_v8 }
 0x38c   :  { %v811_v24 = vpop.permute.xlu1 %810  ;;  %v842_v10 = vpop.permute.xlu0 %841 }
 0x38d   :  { %v861_v21 = vmul.f32 %v842_v10, %v3372_v42  ;;  %1094 = vrot.lane.b32.xlu1 %v866_v0, %s2963_s23  ;;  %v826_v53 = vmul.f32 %v811_v24, %v3352_v31  ;;  %v1045_v24 = vmul.f32 %v1041_v11, %v1036_v22 }
 0x38f   :  { %v867_v25 = vadd.f32 %v861_v21, %v825_v14 }
 0x390   :  { %v847_v38 = vpop.permute.xlu0 %846  ;;  %v816_v28 = vpop.permute.xlu1 %815 }
 0x391   :  { %v862_v27 = vmul.f32 %v847_v38, %v3376_v44  ;;  %1096 = vrot.lane.b32.xlu0 %v867_v25, %s2963_s23  ;;  %v827_v60 = vmul.f32 %v816_v28, %v3356_v34 }
 0x393   :  { %v868_v40 = vadd.f32 %v862_v27, %v826_v53 }
 0x394   :  { %v852_v39 = vpop.permute.xlu0 %851  ;;  %v821_v29 = vpop.permute.xlu1 %820 }
 0x395   :  { %v863_v58 = vmul.f32 %v852_v39, %v3380_v46  ;;  %1098 = vrot.lane.b32.xlu1 %v868_v40, %s2963_s23  ;;  %v828_v45 = vmul.f32 %v821_v29, %v3360_v36 }
 0x397   :  { %v869_v42 = vadd.f32 %v863_v58, %v827_v60 }
 0x398   :  { %v857_v17 = vpop.permute.xlu0 %856 }
 0x399   :  { %v864_v51 = vmul.f32 %v857_v17, %v3384_v48 }
 0x39b   :  { %v870_v31 = vadd.f32 %v864_v51, %v828_v45 }
 0x3db   :  { %v1021_v44 = vpop.permute.xlu1 %1020 }
 0x3dc   :  { %v1026_v33 = vadd.f32 %v1021_v44, %v1004_v47 }
 0x3de   :  { %v1046_v55 = vadd.f32 %v1044_v49, %v1026_v33 }
 0x3df   :  { %v1063_v52 = vpop.permute.xlu1 %1062 }
 0x3e0   :  { %v1068_v10 = vadd.f32 %v1063_v52, %v1046_v55 }
 0x3e1   :  { %v1023_v34 = vpop.permute.xlu0 %1022 }
 0x3e2   :  { %v1027_v46 = vadd.f32 %v1023_v34, %v1005_v15  ;;  %v1072_v25 = vrot.slane %v1068_v10, 4 }
 0x3e3   :  { %v1110_v0 = vpop.permute.xlu1 %1109 }
 0x3e4   :  { %v1047_v14 = vadd.f32 %v1045_v24, %v1027_v46  ;;  %2700 = vmatprep.subr.mxu1 %v1110_v0 }
 0x3e5   :  { %v1065_v21 = vpop.permute.xlu0 %1064  ;;  %2701 = vmatpush3.msra.mxu1 %v1110_v0 }
 0x3e6   :  { %v1069_v36 = vadd.f32 %v1065_v21, %v1047_v14 }
 0x3e8   :  { %v1073_v48 = vrot.slane %v1069_v36, 4 }
 0x3ea   :  { %1077 = vrot.lane.b32.xlu1 %v1073_v48, %s2965_s25  ;;  %v1074_v20 = vsel %vm873_vm1, %v1072_v25, %v1073_v48 }
 0x3eb   :  { %1075 = vrot.lane.b32.xlu0 %v1074_v20, %s2965_s25 }
 0x3ee   :  { %1102 = vrot.lane.b32.xlu1 %v870_v31, %s2963_s23 }
 0x3ef   :  { %1100 = vrot.lane.b32.xlu0 %v869_v42, %s2963_s23 }
 0x3fb   :  { %v1093_v2 = vpop.permute.xlu0 %1092 }
 0x3fc   :  { %2702 = vmatprep.mubr.msk.f32.mxu1 %vm391_vm9, %v1093_v2  ;;  %v2957_v2 = vld [vmem:[%s3802_s2] sm:$0xff]  ;;  %s2989_s2 = smov 11  }
 0x3ff   :  { %v1095_v43 = vpop.permute.xlu1 %1094 }
 0x400   :  { %2703 = vmatmul.mubr.msk.f32.vlgmr.msra.gmra.mrb[42].mxu1 %vm391_vm9, %v1095_v43 }
 0x403   :  { %v1097_v12 = vpop.permute.xlu0 %1096 }
 0x404   :  { %2705 = vmatprep.mubr.msk.f32.mxu1 %vm391_vm9, %v1097_v12 }
 0x407   :  { %v1099_v11 = vpop.permute.xlu1 %1098 }
 0x408   :  { %2706 = vmatmul.mubr.msk.f32.gmra.mrb[44].mxu1 %vm391_vm9, %v1099_v11 }
 0x45c   :  { %v1078_v26 = vpop.permute.xlu1 %1077 }
 0x45d   :  { %1106 = vrot.lane.b32.xlu1 %v1078_v26, %s2963_s23  ;;  %v1076_v8 = vpop.permute.xlu0 %1075 }
 0x45e   :  { %1104 = vrot.lane.b32.xlu0 %v1076_v8, %s2963_s23  ;;  %s2984_s23 = smov 5  }
 0x460   :  { %v1103_v38 = vpop.permute.xlu1 %1102 }
 0x461   :  { %v1101_v22 = vpop.permute.xlu0 %1100 }
 0x462   :  { %2708 = vmatprep.mubr.msk.f32.mxu1 %vm391_vm9, %v1101_v22 }
 0x463   :  { %2709 = vmatmul.mubr.msk.f32.gmra.mrb[46].mxu1 %vm391_vm9, %v1103_v38 }
 0x4cf   :  { %v1107_v53 = vpop.permute.xlu1 %1106 }
 0x4d0   :  { %v1105_v28 = vpop.permute.xlu0 %1104 }
 0x4d1   :  { %2711 = vmatprep.mubr.msk.f32.mxu1 %vm391_vm9, %v1105_v28 }
 0x4d2   :  { %2712 = vmatmul.mubr.msk.f32.gmra.mrb[48].mxu1 %vm391_vm9, %v1107_v53 }
 0x4d3   :  { %v2704_v27 = vpop.f32.mrb[42].mxu1 }
 0x4d4   :  { %1243 = vrot.lane.b32.xlu1 %v2704_v27, %s2966_s26  ;;  %v1194_v40 = vpop.f32.mrb[43].mxu1 }
 0x4d5   :  { %1241 = vrot.lane.b32.xlu0 %v1194_v40, %s2966_s26 }
 0x4db   :  { %v2707_v39 = vpop.f32.mrb[44].mxu1 }
 0x4dc   :  { %1247 = vrot.lane.b32.xlu1 %v2707_v39, %s2966_s26  ;;  %v1204_v60 = vpop.f32.mrb[45].mxu1 }
 0x4dd   :  { %1245 = vrot.lane.b32.xlu0 %v1204_v60, %s2966_s26 }
 0x536   :  { %v2710_v58 = vpop.f32.mrb[46].mxu1 }
 0x537   :  { %1251 = vrot.lane.b32.xlu1 %v2710_v58, %s2966_s26  ;;  %v1214_v29 = vpop.f32.mrb[47].mxu1 }
 0x538   :  { %1249 = vrot.lane.b32.xlu0 %v1214_v29, %s2966_s26 }
 0x546   :  { %v1244_v51 = vpop.permute.xlu1 %1243 }
 0x547   :  { %v1242_v42 = vpop.permute.xlu0 %1241  ;;  %v1266_v44 = vadd.f32 %v1244_v51, %v3303_v9 }
 0x548   :  { %v1265_v17 = vadd.f32 %v1242_v42, %v3296_v4 }
 0x549   :  { %v2449_v52 = vmul.f32 -1.442695, %v1266_v44 }
 0x54a   :  { %v2448_v31 = vmul.f32 -1.442695, %v1265_v17 }
 0x54c   :  { %2887 = vpow2.f32 %v2448_v31 }
 0x54e   :  { %v1248_v33 = vpop.permute.xlu1 %1247 }
 0x54f   :  { %v1246_v45 = vpop.permute.xlu0 %1245  ;;  %v1268_v15 = vadd.f32 %v1248_v33, %v3318_v16 }
 0x550   :  { %v1267_v47 = vadd.f32 %v1246_v45, %v3314_v13 }
 0x551   :  { %v2451_v55 = vmul.f32 -1.442695, %v1268_v15 }
 0x552   :  { %v2450_v49 = vmul.f32 -1.442695, %v1267_v47 }
 0x554   :  { %2889 = vpow2.f32 %v2450_v49 }
 0x555   :  { %2891 = vpow2.f32 %v2449_v52 }
 0x556   :  { %2893 = vpow2.f32 %v2451_v55  ;;  %v2888_v34 = vpop.eup %2887 }
 0x557   :  { %v1297_v24 = vadd.f32 1.0, %v2888_v34 }
 0x559   :  { %2895 = vrcp.f32 %v1297_v24 }
 0x55e   :  { %v2890_v4 = vpop.eup %2889 }
 0x55f   :  { %v2892_v46 = vpop.eup %2891  ;;  %v1299_v0 = vadd.f32 1.0, %v2890_v4 }
 0x560   :  { %v1298_v10 = vadd.f32 1.0, %v2892_v46  ;;  %v2894_v13 = vpop.eup %2893 }
 0x561   :  { %2897 = vrcp.f32 %v1299_v0  ;;  %v1300_v9 = vadd.f32 1.0, %v2894_v13 }
 0x562   :  { %2899 = vrcp.f32 %v1298_v10 }
 0x563   :  { %2901 = vrcp.f32 %v1300_v9  ;;  %v2896_v16 = vpop.eup %2895 }
 0x56b   :  { %v2898_v12 = vpop.eup %2897 }
 0x56c   :  { %v2900_v26 = vpop.eup %2899 }
 0x5a5   :  { %v2713_v14 = vpop.f32.mrb[48].mxu1 }
 0x5a6   :  { %1255 = vrot.lane.b32.xlu1 %v2713_v14, %s2966_s26  ;;  %v1224_v21 = vpop.f32.mrb[49].mxu1 }
 0x5a7   :  { %1253 = vrot.lane.b32.xlu0 %v1224_v21, %s2966_s26 }
 0x5a9   :  { %v1252_v36 = vpop.permute.xlu1 %1251 }
 0x5aa   :  { %v1270_v25 = vadd.f32 %v1252_v36, %v3336_v23  ;;  %1329 = vrot.lane.b32.xlu1 %v2896_v16, %s2967_s1  ;;  %v1250_v48 = vpop.permute.xlu0 %1249  ;;  %v2902_v23 = vpop.eup %2901 }
 0x5ab   :  { %v1269_v20 = vadd.f32 %v1250_v48, %v3325_v19  ;;  %1345 = vrot.lane.b32.xlu0 %v2957_v2, %s2968_s29  ;;  %s2988_s29 = smov 9  }
 0x5ac   :  { %v2453_v43 = vmul.f32 -1.442695, %v1270_v25 }
 0x5ad   :  { %v2452_v11 = vmul.f32 -1.442695, %v1269_v20 }
 0x5ae   :  { %2903 = vpow2.f32 %v2453_v43  ;;  %1333 = vrot.lane.b32.xlu1 %v2898_v12, %s2967_s1 }
 0x5af   :  { %2905 = vpow2.f32 %v2452_v11  ;;  %1331 = vrot.lane.b32.xlu0 %v2900_v26, %s2967_s1 }
 0x5b3   :  { %1335 = vrot.lane.b32.xlu0 %v2902_v23, %s2967_s1 }
 0x5b8   :  { %v2904_v19 = vpop.eup %2903 }
 0x5b9   :  { %v2906_v8 = vpop.eup %2905  ;;  %v1302_v22 = vadd.f32 1.0, %v2904_v19 }
 0x5ba   :  { %v1301_v38 = vadd.f32 1.0, %v2906_v8 }
 0x5bb   :  { %2907 = vrcp.f32 %v1302_v22 }
 0x5bc   :  { %2909 = vrcp.f32 %v1301_v38 }
 0x5c5   :  { %v2908_v28 = vpop.eup %2907 }
 0x5c6   :  { %v2910_v53 = vpop.eup %2909  ;;  %1339 = vrot.lane.b32.xlu0 %v2908_v28, %s2967_s1 }
 0x5c7   :  { %1337 = vrot.lane.b32.xlu1 %v2910_v53, %s2967_s1 }
 0x618   :  { %v1256_v27 = vpop.permute.xlu1 %1255 }
 0x619   :  { %v1272_v40 = vadd.f32 %v1256_v27, %v1082_v1  ;;  %v1254_v39 = vpop.permute.xlu0 %1253 }
 0x61a   :  { %v1271_v60 = vadd.f32 %v1254_v39, %v3294_v3 }
 0x61b   :  { %v2455_v58 = vmul.f32 -1.442695, %v1272_v40 }
 0x61c   :  { %v2454_v29 = vmul.f32 -1.442695, %v1271_v60  ;;  %v1330_v42 = vpop.permute.xlu1 %1329 }
 0x61d   :  { %2911 = vpow2.f32 %v2455_v58  ;;  %2716 = vmatprep.mubr.msk.f32.mxu0 %vm391_vm9, %v1330_v42  ;;  %v1346_v17 = vpop.permute.xlu0 %1345 }
 0x61e   :  { %2913 = vpow2.f32 %v2454_v29  ;;  %2714 = vmatprep.subr.mxu0 %v1346_v17 }
 0x61f   :  { %2715 = vmatpush3.msra.mxu0 %v1346_v17 }
 0x620   :  { %2782 = vmatprep.subr.bf16.mxu0 %v2959_v5  ;;  %v1334_v51 = vpop.permute.xlu1 %1333 }
 0x621   :  { %v1332_v45 = vpop.permute.xlu0 %1331 }
 0x622   :  { %2717 = vmatmul.mubr.msk.f32.vlgmr.msra.gmra.mrb[42].mxu0 %vm391_vm9, %v1332_v45 }
 0x623   :  { %2719 = vmatprep.mubr.msk.f32.mxu0 %vm391_vm9, %v1334_v51 }
 0x625   :  { %v1336_v63 = vpop.permute.xlu0 %1335 }
 0x626   :  { %2720 = vmatmul.mubr.msk.f32.gmra.mrb[44].mxu0 %vm391_vm9, %v1336_v63 }
 0x627   :  { %v2912_v1 = vpop.eup %2911 }
 0x628   :  { %v2914_v3 = vpop.eup %2913  ;;  %v1304_v31 = vadd.f32 1.0, %v2912_v1 }
 0x629   :  { %v1303_v47 = vadd.f32 1.0, %v2914_v3 }
 0x62a   :  { %2915 = vrcp.f32 %v1304_v31 }
 0x62b   :  { %2917 = vrcp.f32 %v1303_v47 }
 0x634   :  { %v2916_v44 = vpop.eup %2915 }
 0x635   :  { %v2918_v33 = vpop.eup %2917  ;;  %1343 = vrot.lane.b32.xlu0 %v2916_v44, %s2967_s1 }
 0x636   :  { %1341 = vrot.lane.b32.xlu1 %v2918_v33, %s2967_s1 }
 0x638   :  { %v1340_v52 = vpop.permute.xlu0 %1339 }
 0x639   :  { %v1338_v49 = vpop.permute.xlu1 %1337 }
 0x63a   :  { %2722 = vmatprep.mubr.msk.f32.mxu0 %vm391_vm9, %v1338_v49 }
 0x63b   :  { %2723 = vmatmul.mubr.msk.f32.gmra.mrb[46].mxu0 %vm391_vm9, %v1340_v52 }
 0x6a7   :  { %v1344_v55 = vpop.permute.xlu0 %1343 }
 0x6a8   :  { %v1342_v15 = vpop.permute.xlu1 %1341 }
 0x6a9   :  { %2725 = vmatprep.mubr.msk.f32.mxu0 %vm391_vm9, %v1342_v15 }
 0x6aa   :  { %2726 = vmatmul.mubr.msk.f32.gmra.mrb[48].mxu0 %vm391_vm9, %v1344_v55 }
 0x6ab   :  { %2751 = vmatprep.mubr.msk.f32.mxu0 %vm2960_vm0, %v2961_v6 }
 0x6f5   :  { %v3576_v34 = vpop.f32.mrb[42].mxu0 }
 0x6f6   :  { %1473 = vrot.lane.b32.xlu1 %v3576_v34, %s2962_s22  ;;  %v3580_v24 = vpop.f32.mrb[43].mxu0  ;;  %v1486_v10 = vrot.slane %v3576_v34, 4 }
 0x6f9   :  { %v3582_v4 = vpop.f32.mrb[44].mxu0 }
 0x6fa   :  { %1471 = vrot.lane.b32.xlu1 %v3580_v24, %s2962_s22  ;;  %v1440_v46 = vpop.f32.mrb[45].mxu0 }
 0x6fb   :  { %v3586_v0 = vrot.slane %v1440_v46, 4 }
 0x6fd   :  { %1491 = vrot.lane.b32.xlu0 %v3586_v0, %s2962_s22  ;;  %v3595_v13 = vsel %vm873_vm1, %v1486_v10, %v3586_v0 }
 0x6fe   :  { %1505 = vrot.lane.b32.xlu1 %v3582_v4, %s2962_s22 }
 0x701   :  { %1489 = vrot.lane.b32.xlu0 %v3595_v13, %s2962_s22 }
 0x70e   :  { %v2724_v9 = vpop.f32.mrb[46].mxu0 }
 0x70f   :  { %v3599_v14 = vrot.slane %v2724_v9, 4  ;;  %v3601_v21 = vpop.f32.mrb[47].mxu0 }
 0x710   :  { %v1520_v16 = vrot.slane %v3601_v21, 4  ;;  %1507 = vrot.lane.b32.xlu0 %v3601_v21, %s2962_s22 }
 0x712   :  { %v3608_v36 = vsel %vm873_vm1, %v1520_v16, %v3599_v14 }
 0x713   :  { %1523 = vrot.lane.b32.xlu1 %v3608_v36, %s2962_s22 }
 0x714   :  { %1525 = vrot.lane.b32.xlu0 %v3599_v14, %s2962_s22  ;;  %s2983_s22 = smov 4  }
 0x768   :  { %v1474_v25 = vpop.permute.xlu1 %1473 }
 0x76c   :  { %v1472_v20 = vpop.permute.xlu1 %1471 }
 0x76f   :  { %v1492_v48 = vpop.permute.xlu0 %1491 }
 0x770   :  { %v1506_v23 = vpop.permute.xlu1 %1505 }
 0x773   :  { %v1490_v43 = vpop.permute.xlu0 %1489 }
 0x77d   :  { %v2727_v2 = vpop.f32.mrb[48].mxu0 }
 0x77e   :  { %v1478_v12 = vadd.f32 %v2727_v2, %v1474_v25  ;;  %v1496_v11 = vadd.f32 %v2727_v2, %v1492_v48  ;;  %v1460_v26 = vpop.f32.mrb[49].mxu0 }
 0x77f   :  { %v1477_v19 = vadd.f32 %v1472_v20, %v1460_v26  ;;  %v1495_v8 = vadd.f32 %v1490_v43, %v1460_v26  ;;  %v1511_v28 = vadd.f32 %v1506_v23, %v1460_v26 }
 0x780   :  { %vm1480_vm3 = vcmp.gt.f32.partialorder %v1478_v12, 0.0  ;;  %v1482_v22 = vmul.f32 0.01, %v1478_v12  ;;  %v1500_v38 = vmul.f32 0.01, %v1496_v11  ;;  %vm1498_vm6 = vcmp.gt.f32.partialorder %v1496_v11, 0.0 }
 0x781   :  { %vm1479_vm4 = vcmp.gt.f32.partialorder %v1477_v19, 0.0  ;;  %v1481_v53 = vmul.f32 0.01, %v1477_v19  ;;  %vm1497_vm5 = vcmp.gt.f32.partialorder %v1495_v8, 0.0  ;;  %v1499_v27 = vmul.f32 0.01, %v1495_v8 }
 0x782   :  { %v1508_v40 = vpop.permute.xlu0 %1507  ;;  %vm1513_vm7 = vcmp.gt.f32.partialorder %v1511_v28, 0.0  ;;  %v1515_v29 = vmul.f32 0.01, %v1511_v28  ;;  %v1484_v42 = vsel %vm1480_vm3, %v1478_v12, %v1482_v22  ;;  %v1502_v17 = vsel %vm1498_vm6, %v1496_v11, %v1500_v38 }
 0x783   :  { %v1483_v39 = vsel %vm1479_vm4, %v1477_v19, %v1481_v53  ;;  %v1501_v60 = vsel %vm1497_vm5, %v1495_v8, %v1499_v27  ;;  %v1512_v58 = vadd.f32 %v2727_v2, %v1508_v40  ;;  %v1538_v44 = vmax.f32 %v1484_v42, %v1502_v17 }
 0x784   :  { %v1537_v63 = vmax.f32 %v1483_v39, %v1501_v60  ;;  %v1517_v33 = vsel %vm1513_vm7, %v1511_v28, %v1515_v29  ;;  %vm1760_vm3 = vcmask 48128   ;;  %vm1763_vm4 = vcmask 56320  }
 0x785   :  { %vm1514_vm8 = vcmp.gt.f32.partialorder %v1512_v58, 0.0  ;;  %v1516_v45 = vmul.f32 0.01, %v1512_v58  ;;  %v1524_v51 = vpop.permute.xlu1 %1523  ;;  %vm1768_vm5 = vcmask 72704   ;;  %vm1774_vm6 = vcmask 89088  }
 0x786   :  { %v1529_v1 = vadd.f32 %v1524_v51, %v1460_v26  ;;  %v1526_v3 = vpop.permute.xlu0 %1525  ;;  %v1539_v52 = vmax.f32 %v1537_v63, %v1517_v33  ;;  %vm1771_vm7 = vcmask 80896  }
 0x787   :  { %v1518_v31 = vsel %vm1514_vm8, %v1512_v58, %v1516_v45  ;;  %v1530_v47 = vadd.f32 %v2727_v2, %v1526_v3  ;;  %vm1779_vm8 = vcmask 93184  }
 0x788   :  { %vm1531_vm10 = vcmp.gt.f32.partialorder %v1529_v1, 0.0  ;;  %v1533_v49 = vmul.f32 0.01, %v1529_v1  ;;  %v1540_v55 = vmax.f32 %v1538_v44, %v1518_v31 }
 0x789   :  { %vm1532_vm11 = vcmp.gt.f32.partialorder %v1530_v47, 0.0  ;;  %v1534_v15 = vmul.f32 0.01, %v1530_v47 }
 0x78a   :  { %v1535_v46 = vsel %vm1531_vm10, %v1529_v1, %v1533_v49  ;;  %vm1777_vm10 = vcmask 97280  }
 0x78b   :  { %v1541_v10 = vmax.f32 %v1539_v52, %v1535_v46  ;;  %v1536_v9 = vsel %vm1532_vm11, %v1530_v47, %v1534_v15  ;;  %vm2386_vm11 = vcmask 261120  }
 0x78c   :  { %v1542_v16 = vmax.f32 %v1540_v55, %v1536_v9 }
 0x78d   :  { %v1543_v25 = vsub.f32 %v1483_v39, %v1541_v10  ;;  %v1549_v48 = vsub.f32 %v1501_v60, %v1541_v10  ;;  %v1555_v20 = vsub.f32 %v1517_v33, %v1541_v10  ;;  %v1561_v43 = vsub.f32 %v1535_v46, %v1541_v10 }
 0x78e   :  { %v1544_v12 = vsub.f32 %v1484_v42, %v1542_v16  ;;  %v1550_v11 = vsub.f32 %v1502_v17, %v1542_v16  ;;  %v1556_v8 = vsub.f32 %v1518_v31, %v1542_v16  ;;  %v1562_v28 = vsub.f32 %v1536_v9, %v1542_v16 }
 0x78f   :  { %v1545_v26 = vmul.f32 1.442695, %v1543_v25  ;;  %v1551_v2 = vmul.f32 1.442695, %v1549_v48  ;;  %v1557_v23 = vmul.f32 1.442695, %v1555_v20 }
 0x790   :  { %v1563_v19 = vmul.f32 1.442695, %v1561_v43  ;;  %v1547_v22 = vmul.f32 1.442695, %v1544_v12  ;;  %v1553_v38 = vmul.f32 1.442695, %v1550_v11 }
 0x791   :  { %2919 = vpow2.f32 %v1545_v26  ;;  %v1559_v53 = vmul.f32 1.442695, %v1556_v8  ;;  %v1565_v27 = vmul.f32 1.442695, %v1562_v28  ;;  %v22_v20 = vld [vmem:[%s3803_s3 + $0x10] sm:$0xff] }
 0x792   :  { %2921 = vpow2.f32 %v1551_v2  ;;  %2728 = vmatprep.subr.mxu1 %v22_v20 }
 0x793   :  { %2923 = vpow2.f32 %v1557_v23  ;;  %2729 = vmatpush3.msra.mxu1 %v22_v20 }
 0x794   :  { %2925 = vpow2.f32 %v1563_v19  ;;  %2733 = vmatprep.subr.mxu1 %v2961_v6 }
 0x795   :  { %2927 = vpow2.f32 %v1547_v22 }
 0x796   :  { %2929 = vpow2.f32 %v1553_v38 }
 0x797   :  { %2931 = vpow2.f32 %v1559_v53 }
 0x798   :  { %2933 = vpow2.f32 %v1565_v27 }
 0x79b   :  { %v2920_v40 = vpop.eup %2919 }
 0x79c   :  { %v2922_v39 = vpop.eup %2921 }
 0x79d   :  { %v2924_v60 = vpop.eup %2923  ;;  %v1567_v58 = vadd.f32 %v2922_v39, %v2920_v40 }
 0x79e   :  { %v2926_v29 = vpop.eup %2925 }
 0x79f   :  { %v2928_v42 = vpop.eup %2927  ;;  %v1569_v17 = vadd.f32 %v2924_v60, %v1567_v58 }
 0x7a0   :  { %v2930_v45 = vpop.eup %2929 }
 0x7a1   :  { %v1571_v51 = vadd.f32 %v2926_v29, %v1569_v17  ;;  %v1568_v63 = vadd.f32 %v2930_v45, %v2928_v42  ;;  %v2932_v1 = vpop.eup %2931 }
 0x7a2   :  { %v2934_v31 = vpop.eup %2933 }
 0x7a3   :  { %2935 = vrcp.f32 %v1571_v51  ;;  %v1570_v3 = vadd.f32 %v2932_v1, %v1568_v63 }
 0x7a5   :  { %v1572_v47 = vadd.f32 %v2934_v31, %v1570_v3  ;;  %v20_v3 = vld [vmem:[%s3803_s3] sm:$0xff] }
 0x7a7   :  { %2937 = vrcp.f32 %v1572_v47 }
 0x7ad   :  { %v2936_v44 = vpop.eup %2935 }
 0x7ae   :  { %v3614_v33 = vmul.f32 %v2936_v44, %v2922_v39  ;;  %v3619_v15 = vmul.f32 %v2936_v44, %v2926_v29  ;;  %v3632_v46 = vmul.f32 %v2936_v44, %v2920_v40  ;;  %v3639_v9 = vmul.f32 %v2936_v44, %v2924_v60 }
 0x7b0   :  { %1599 = vperm.xlu1 %2825, %v3614_v33  }
 0x7b1   :  { %v2938_v49 = vpop.eup %2937 }
 0x7b2   :  { %v3617_v52 = vmul.f32 %v2938_v49, %v2930_v45  ;;  %v3623_v55 = vmul.f32 %v2938_v49, %v2934_v31  ;;  %v3637_v10 = vmul.f32 %v2938_v49, %v2928_v42 }
 0x7b4   :  { %1604 = vperm.xlu0 %2824, %v3617_v52   ;;  %1641 = vperm.xlu1 %2825, %v3619_v15  }
 0x7b8   :  { %1646 = vperm.xlu0 %2824, %v3623_v55   ;;  %1607 = vrot.lane.b32.xlu1 %v3595_v13, %s2967_s1  ;;  %v3643_v13 = vmul.f32 %v2938_v49, %v2932_v1 }
 0x7bc   :  { %1609 = vrot.lane.b32.xlu0 %v3586_v0, %s2967_s1  ;;  %1649 = vrot.lane.b32.xlu1 %v3608_v36, %s2967_s1 }
 0x7c0   :  { %1651 = vrot.lane.b32.xlu0 %v3599_v14, %s2967_s1  ;;  %1587 = vperm.xlu1 %2825, %v3632_v46  }
 0x7c4   :  { %1592 = vperm.xlu0 %2824, %v3637_v10   ;;  %1627 = vperm.xlu1 %2825, %v3639_v9  }
 0x7c8   :  { %1632 = vperm.xlu0 %2824, %v3643_v13  }
 0x82f   :  { %v1600_v0 = vpop.permute.xlu1 %1599 }
 0x833   :  { %v1605_v36 = vpop.permute.xlu0 %1604  ;;  %v1642_v16 = vpop.permute.xlu1 %1641 }
 0x837   :  { %v1647_v25 = vpop.permute.xlu0 %1646  ;;  %v1608_v48 = vpop.permute.xlu1 %1607 }
 0x838   :  { %v1613_v14 = vmul.f32 %v1608_v48, %v1600_v0 }
 0x83a   :  { %1617 = vrot.lane.b32.xlu1 %v1613_v14, %s2966_s26 }
 0x83b   :  { %v1610_v43 = vpop.permute.xlu0 %1609  ;;  %v1650_v12 = vpop.permute.xlu1 %1649 }
 0x83c   :  { %v1614_v11 = vmul.f32 %v1610_v43, %v1605_v36  ;;  %v1655_v26 = vmul.f32 %v1650_v12, %v1642_v16 }
 0x83e   :  { %1619 = vrot.lane.b32.xlu0 %v1614_v11, %s2966_s26  ;;  %1659 = vrot.lane.b32.xlu1 %v1655_v26, %s2966_s26 }
 0x83f   :  { %v1652_v2 = vpop.permute.xlu0 %1651  ;;  %v1588_v19 = vpop.permute.xlu1 %1587 }
 0x840   :  { %v1656_v23 = vmul.f32 %v1652_v2, %v1647_v25  ;;  %v1595_v38 = vmul.f32 %v1588_v19, %v3580_v24 }
 0x842   :  { %1661 = vrot.lane.b32.xlu0 %v1656_v23, %s2966_s26 }
 0x843   :  { %v1593_v8 = vpop.permute.xlu0 %1592  ;;  %v1628_v22 = vpop.permute.xlu1 %1627 }
 0x844   :  { %v1635_v27 = vmul.f32 %v3582_v4, %v1628_v22  ;;  %v1596_v39 = vmul.f32 %v3576_v34, %v1593_v8  ;;  %v3807_v4 = vlaneseq }
 0x847   :  { %v1633_v28 = vpop.permute.xlu0 %1632 }
 0x848   :  { %v1636_v42 = vmul.f32 %v1633_v28, %v3601_v21  ;;  %v1877_v21 = vshrl.u32 %v3807_v4, 7 }
 0x84a   :  { %v1878_v31 = vsub.s32 0, %v1877_v21 }
 0x84c   :  { %v1879_v47 = vrot.slane %v20_v3, %v1878_v31 }
 0x8ac   :  { %v1618_v53 = vpop.permute.xlu1 %1617 }
 0x8ad   :  { %v1623_v40 = vadd.f32 %v1618_v53, %v1595_v38 }
 0x8af   :  { %v1637_v60 = vadd.f32 %v1635_v27, %v1623_v40 }
 0x8b0   :  { %v1620_v58 = vpop.permute.xlu0 %1619  ;;  %v1660_v29 = vpop.permute.xlu1 %1659 }
 0x8b1   :  { %v1624_v17 = vadd.f32 %v1620_v58, %v1596_v39  ;;  %v1665_v45 = vadd.f32 %v1660_v29, %v1637_v60 }
 0x8b3   :  { %v1638_v51 = vadd.f32 %v1636_v42, %v1624_v17  ;;  %1783 = vrot.lane.b32.xlu1 %v1665_v45, %s2967_s1 }
 0x8b4   :  { %v1662_v63 = vpop.permute.xlu0 %1661 }
 0x8b5   :  { %v3659_v1 = vadd.f32 %v1662_v63, %v1638_v51 }
 0x8b7   :  { %1785 = vrot.lane.b32.xlu0 %v3659_v1, %s2967_s1 }
 0x8bb   :  { %1881 = vrot.lane.b32.xlu0 %v1879_v47, %s2969_s8 }
 0x8bf   :  { %1900 = vrot.lane.b32.xlu0 %v22_v20, %s2972_s11 }
 0x925   :  { %v1784_v24 = vpop.permute.xlu1 %1783 }
 0x926   :  { %2730 = vmatprep.mubr.msk.f32.mxu1 %vm391_vm9, %v1784_v24 }
 0x929   :  { %v1786_v34 = vpop.permute.xlu0 %1785 }
 0x92a   :  { %2731 = vmatmul.mubr.msk.f32.vlgmr.msra.gmra.mrb[50].mxu1 %vm391_vm9, %v1786_v34 }
 0x92b   :  { %2735 = vmatprep.mubr.msk.f32.mxu1 %vm2960_vm0, %v2961_v6 }
 0x92d   :  { %v3676_v36 = vpop.permute.xlu0 %1881 }
 0x931   :  { %v3683_v12 = vpop.permute.xlu0 %1900 }
 0x932   :  { %2734 = vmatpush3.msra.mxu1 %v3683_v12 }
 0x933   :  { %2779 = vmatprep.subr.bf16.mxu1 %v2959_v5 }
 0x9fd   :  { %v3671_v44 = vpop.f32.mrb[50].mxu1 }
 0x9fe   :  { %v1857_v49 = vpop.f32.mrb[51].mxu1 }
 0x9ff   :  { %1868 = vrot.lane.b32.xlu1 %v1857_v49, %s2970_s9 }
 0xa03   :  { %1892 = vrot.lane.b32.xlu1 %v1665_v45, %s2971_s10 }
 0xa71   :  { %v1869_v0 = vpop.permute.xlu1 %1868 }
 0xa72   :  { %v1874_v16 = vadd.f32 %v1869_v0, %v3283_v59  ;;  %v21_v59 = vld [vmem:[%s3803_s3 + $0x8] sm:$0xff]  ;;  %s2975_s3 = smov 70  }
 0xa73   :  { %v2780_v2 = vpack.c.bf16 %v21_v59, %v20_v3  ;;  %v2826_v58 = vpack.i.bf16 %v21_v59, %v20_v3 }
 0xa74   :  { %v3680_v25 = vadd.f32 %v3676_v36, %v1874_v16 }
 0xa75   :  { %v1893_v11 = vpop.permute.xlu1 %1892 }
 0xa76   :  { %v2466_v48 = vmul.f32 -1.442695, %v3680_v25 }
 0xa78   :  { %2939 = vpow2.f32 %v2466_v48 }
 0xa82   :  { %v2940_v14 = vpop.eup %2939 }
 0xa83   :  { %v1889_v43 = vadd.f32 1.0, %v2940_v14 }
 0xa85   :  { %2941 = vrcp.f32 %v1889_v43 }
 0xa8f   :  { %v2942_v20 = vpop.eup %2941 }
 0xa90   :  { %v1895_v26 = vmul.f32 %v2942_v20, %v1893_v11 }
 0xa92   :  { %1897 = vrot.lane.b32.xlu1 %v1895_v26, %s2973_s12 }
 0xb04   :  { %v1898_v23 = vpop.permute.xlu1 %1897 }
 0xb05   :  { %2736 = vmatmul.mubr.msk.f32.vlgmr.msra.gmra.mrb[52].mxu1 %vm391_vm9, %v1898_v23 }
 0xb06   :  { %2781 = vmatpush3.bf16.msra.mxu1 %v2780_v2  ;;  %2742 = vmatprep.mubr.msk.f32.mxu1 %vm2960_vm0, %v2961_v6 }
 0xb07   :  { %2785 = vmatprep.subr.bf16.mxu1 %v2959_v5 }
 0xbd8   :  { %v1971_v19 = vpop.f32.mrb[52].mxu1 }
 0xbd9   :  { %1976 = vrot.lane.b32.xlu0 %v1971_v19, %s2974_s15  ;;  %v2737_v8 = vpop.f32.mrb[53].mxu1 }
 0xc4b   :  { %v1977_v22 = vpop.permute.xlu0 %1976 }
 0xc4c   :  { %v1979_v38 = vadd.f32 %v1977_v22, %v3680_v25 }
 0xc4e   :  { %2943 = vtanh.f32 %v1979_v38 }
 0xc58   :  { %v2944_v28 = vpop.eup %2943 }
 0xc59   :  { %1982 = vrot.lane.b32.xlu1 %v2944_v28, %s2975_s3  ;;  %v2069_v53 = vrot.slane %v2944_v28, 4 }
 0xc5d   :  { %2070 = vrot.lane.b32.xlu1 %v2069_v53, %s2976_s16 }
 0xccb   :  { %v3696_v27 = vpop.permute.xlu1 %1982 }
 0xccc   :  { %2743 = vmatmul.mubr.msk.f32.vlgmr.msra.gmra.mrb[54].mxu1 %vm1984_vm12, %v3696_v27 }
 0xccd   :  { %2787 = vmatpush3.bf16.msra.mxu1 %v2780_v2  ;;  %2758 = vmatprep.mubr.msk.f32.mxu1 %vm2960_vm0, %v2961_v6 }
 0xccf   :  { %v2071_v3 = vpop.permute.xlu1 %2070 }
 0xd9f   :  { %v2053_v40 = vpop.f32.mrb[54].mxu1 }
 0xda0   :  { %v2058_v39 = vrot.slane %v2053_v40, 4  ;;  %v2744_v60 = vpop.f32.mrb[55].mxu1 }
 0xda2   :  { %2059 = vrot.lane.b32.xlu0 %v2058_v39, %s2970_s9 }
 0xda6   :  { %2827 = vrot.lane.b32.xlu0 %v2826_v58, %s2972_s11 }
 0xe14   :  { %v2060_v29 = vpop.permute.xlu0 %2059 }
 0xe15   :  { %v2062_v42 = vadd.f32 %v2060_v29, %v3680_v25 }
 0xe17   :  { %v2469_v17 = vmul.f32 -1.442695, %v2062_v42 }
 0xe18   :  { %v2828_v45 = vpop.permute.xlu0 %2827 }
 0xe19   :  { %2945 = vpow2.f32 %v2469_v17  ;;  %v2830_v51 = vunpack.i.h.bf16 %v2828_v45  ;;  %v2829_v63 = vunpack.i.l.bf16 %v2828_v45 }
 0xe1b   :  { %v2783_v24 = vpack.c.bf16 %v2830_v51, %v2829_v63 }
 0xe1d   :  { %2784 = vmatpush3.bf16.msra.mxu0 %v2783_v24 }
 0xe1e   :  { %2749 = vmatprep.subr.mxu0 %v2961_v6 }
 0xe21   :  { %2750 = vmatpush3.msra.mxu0 %v3683_v12 }
 0xe22   :  { %2788 = vmatprep.subr.bf16.mxu0 %v2959_v5 }
 0xe23   :  { %v2946_v34 = vpop.eup %2945 }
 0xe24   :  { %v2066_v4 = vadd.f32 1.0, %v2946_v34 }
 0xe26   :  { %2947 = vrcp.f32 %v2066_v4  ;;  %v1686_v4 = vrot.slane %v3470_v41, 4  ;;  %v1727_v41 = vrot.slane %v3482_v30, 4 }
 0xe30   :  { %v2948_v21 = vpop.eup %2947 }
 0xe31   :  { %v2074_v31 = vmul.f32 %v2948_v21, %v1893_v11  ;;  %v2073_v47 = vmul.f32 %v2948_v21, %v2071_v3  ;;  %v2174_v2 = vsub.f32 1.0, %v2948_v21  ;;  %v1695_v3 = vrot.slane %v3478_v62, 4 }
 0xe33   :  { %2080 = vrot.lane.b32.xlu0 %v2074_v31, %s2977_s17  ;;  %2076 = vrot.lane.b32.xlu1 %v2073_v47, %s2977_s17 }
 0xe37   :  { %2175 = vrot.lane.b32.xlu0 %v2069_v53, %s2978_s18 }
 0xea5   :  { %v2077_v49 = vpop.permute.xlu1 %2076  ;;  %v2081_v0 = vpop.permute.xlu0 %2080 }
 0xea6   :  { %v2083_v16 = vsel %vm1984_vm12, %v2077_v49, %v2081_v0 }
 0xea7   :  { %v2085_v5 = vrot.slane %v2083_v16, 4 }
 0xea9   :  { %2752 = vmatmul.mubr.msk.f32.vlgmr.msra.gmra.mrb[50].mxu0 %vm2094_vm13, %v2085_v5  ;;  %v2176_v59 = vpop.permute.xlu0 %2175 }
 0xeaa   :  { %2790 = vmatpush3.bf16.msra.mxu0 %v2783_v24  ;;  %2767 = vmatprep.mubr.msk.f32.mxu0 %vm2960_vm0, %v2961_v6  ;;  %v2178_v23 = vmul.f32 %v2176_v59, %v2174_v2  ;;  %vm1745_vm0 = vcmask 7168  }
 0xeab   :  { %2765 = vmatprep.subr.mxu0 %v2961_v6 }
 0xeae   :  { %2766 = vmatpush3.msra.mxu0 %v3683_v12 }
 0xf7c   :  { %v2163_v48 = vpop.f32.mrb[50].mxu0 }
 0xf7d   :  { %v2168_v14 = vrot.slane %v2163_v48, 4  ;;  %v2753_v43 = vpop.f32.mrb[51].mxu0 }
 0xf7f   :  { %2169 = vrot.lane.b32.xlu1 %v2168_v14, %s2974_s15 }
 0xff1   :  { %v2170_v20 = vpop.permute.xlu1 %2169 }
 0xff2   :  { %v2172_v11 = vadd.f32 %v2170_v20, %v3680_v25 }
 0xff4   :  { %2949 = vtanh.f32 %v2172_v11 }
 0xffe   :  { %v2950_v26 = vpop.eup %2949 }
 0xfff   :  { %2180 = vrot.lane.b32.xlu1 %v2950_v26, %s2978_s18 }
0x1003   :  { %1870 = vrot.lane.b32.xlu1 %v3671_v44, %s2970_s9 }
0x1071   :  { %v2181_v6 = vpop.permute.xlu1 %2180 }
0x1072   :  { %v2183_v12 = vmul.f32 %v2948_v21, %v2181_v6  ;;  %v1685_v21 = vrot.slane %v3464_v18, 4 }
0x1074   :  { %v2184_v19 = vadd.f32 %v2183_v12, %v2178_v23  ;;  %v1687_v31 = vsel %vm873_vm1, %v1685_v21, %v1686_v4 }
0x1075   :  { %v1871_v38 = vpop.permute.xlu1 %1870 }
0x1076   :  { %v3722_v8 = vrot.slane %v2184_v19, 4  ;;  %v1875_v28 = vadd.f32 %v1871_v38, %v3285_v61 }
0x1078   :  { %2272 = vrot.lane.b32.xlu1 %v3722_v8, %s2979_s19  ;;  %2187 = vrot.lane.b32.xlu0 %v3722_v8, %s2980_s20  ;;  %v1885_v53 = vadd.f32 %v3676_v36, %v1875_v28 }
0x10ea   :  { %v2188_v25 = vpop.permute.xlu0 %2187  ;;  %v2273_v17 = vpop.permute.xlu1 %2272 }
0x10eb   :  { %2759 = vmatmul.mubr.msk.f32.vlgmr.msra.gmra.mrb[56].mxu1 %vm1984_vm12, %v2188_v25 }
0x11be   :  { %v2257_v22 = vpop.f32.mrb[56].mxu1 }
0x11bf   :  { %2262 = vrot.lane.b32.xlu0 %v2257_v22, %s2970_s9  ;;  %v2760_v44 = vpop.f32.mrb[57].mxu1 }
0x11c3   :  { %2276 = vrot.lane.b32.xlu0 %v3659_v1, %s2971_s10 }
0x1231   :  { %v2263_v40 = vpop.permute.xlu0 %2262 }
0x1232   :  { %v2265_v39 = vadd.f32 %v2263_v40, %v1885_v53 }
0x1234   :  { %v2472_v60 = vmul.f32 -1.442695, %v2265_v39 }
0x1235   :  { %v2277_v45 = vpop.permute.xlu0 %2276 }
0x1236   :  { %2951 = vpow2.f32 %v2472_v60 }
0x1240   :  { %v2952_v58 = vpop.eup %2951 }
0x1241   :  { %v2269_v29 = vadd.f32 1.0, %v2952_v58 }
0x1243   :  { %2953 = vrcp.f32 %v2269_v29 }
0x124d   :  { %v3732_v42 = vpop.eup %2953 }
0x124e   :  { %v2279_v51 = vmul.f32 %v3732_v42, %v2277_v45  ;;  %v2275_v1 = vmul.f32 %v3732_v42, %v2273_v17  ;;  %v2368_v49 = vsub.f32 1.0, %v3732_v42 }
0x1250   :  { %2281 = vrot.lane.b32.xlu1 %v2275_v1, %s2977_s17  ;;  %2285 = vrot.lane.b32.xlu0 %v2279_v51, %s2977_s17 }
0x12c2   :  { %v2282_v61 = vpop.permute.xlu1 %2281  ;;  %v2286_v36 = vpop.permute.xlu0 %2285 }
0x12c3   :  { %v2288_v63 = vsel %vm1984_vm12, %v2282_v61, %v2286_v36 }
0x12c4   :  { %2768 = vmatmul.mubr.msk.f32.vlgmr.msra.gmra.mrb[52].mxu0 %vm2094_vm13, %v2288_v63  ;;  %vm2388_vm13 = vcmask 388096  }
0x1397   :  { %v2358_v24 = vpop.f32.mrb[52].mxu0 }
0x1398   :  { %2363 = vrot.lane.b32.xlu1 %v2358_v24, %s2974_s15  ;;  %v2769_v34 = vpop.f32.mrb[53].mxu0 }
0x139c   :  { %1667 = vrot.lane.b32.xlu1 %v3459_v37, %s2981_s0  ;;  %v1694_v37 = vrot.slane %v3472_v57, 4 }
0x139e   :  { %v1696_v47 = vsel %vm873_vm1, %v1694_v37, %v1695_v3 }
0x13a0   :  { %1673 = vrot.lane.b32.xlu1 %v3466_v35, %s2966_s26  ;;  %v1728_v35 = vrot.slane %v3488_v56, 4 }
0x13a2   :  { %v1729_v62 = vsel %vm873_vm1, %v1727_v41, %v1728_v35 }
0x13a4   :  { %1679 = vrot.lane.b32.xlu1 %v3614_v33, %s2982_s21  ;;  %v1737_v33 = vrot.slane %v3494_v7, 4 }
0x13a8   :  { %1688 = vrot.lane.b32.xlu1 %v1687_v31, %s2983_s22 }
0x13ac   :  { %1697 = vrot.lane.b32.xlu1 %v1696_v47, %s2984_s23 }
0x13b0   :  { %1703 = vrot.lane.b32.xlu1 %v3639_v9, %s2985_s24 }
0x13b4   :  { %1709 = vrot.lane.b32.xlu1 %v3476_v50, %s2986_s27 }
0x13b8   :  { %1715 = vrot.lane.b32.xlu1 %v3484_v32, %s2987_s28 }
0x13bc   :  { %1721 = vrot.lane.b32.xlu1 %v3619_v15, %s2988_s29 }
0x13c0   :  { %1730 = vrot.lane.b32.xlu1 %v1729_v62, %s2965_s25 }
0x13c4   :  { %2378 = vrot.lane.b32.xlu1 %v3722_v8, %s2967_s1 }
0x13c8   :  { %1741 = vrot.lane.b32.xlu1 %v1737_v33, %s2989_s2 }
0x140a   :  { %v2364_v50 = vpop.permute.xlu1 %2363 }
0x140b   :  { %v2366_v32 = vadd.f32 %v2364_v50, %v1885_v53 }
0x140d   :  { %2955 = vtanh.f32 %v2366_v32 }
0x140e   :  { %v1668_v7 = vpop.permute.xlu1 %1667 }
0x140f   :  { %v1746_v22 = vsel %vm1745_vm0, %v3632_v46, %v1668_v7 }
0x1417   :  { %v2956_v56 = vpop.eup %2955 }
0x1418   :  { %2372 = vrot.lane.b32.xlu0 %v2956_v56, %s2978_s18 }
0x141c   :  { %1669 = vrot.lane.b32.xlu0 %v3464_v18, %s2981_s0  ;;  %v1736_v18 = vrot.slane %v3490_v54, 4 }
0x1420   :  { %1675 = vrot.lane.b32.xlu0 %v3472_v57, %s2966_s26  ;;  %v1738_v57 = vsel %vm873_vm1, %v1736_v18, %v1737_v33  ;;  %vm1748_vm1 = vcmask 15360  }
0x1424   :  { %1681 = vrot.lane.b32.xlu0 %v3617_v52, %s2982_s21  ;;  %v1674_v52 = vpop.permute.xlu1 %1673 }
0x1425   :  { %v1749_v28 = vsel %vm1748_vm1, %v1746_v22, %v1674_v52 }
0x1428   :  { %1690 = vrot.lane.b32.xlu0 %v1686_v4, %s2983_s22  ;;  %v1680_v15 = vpop.permute.xlu1 %1679 }
0x1429   :  { %v1752_v39 = vsel %vm1751_vm14, %v1749_v28, %v1680_v15 }
0x142c   :  { %1699 = vrot.lane.b32.xlu0 %v1695_v3, %s2984_s23  ;;  %v1689_v9 = vpop.permute.xlu1 %1688 }
0x142d   :  { %v1755_v58 = vsel %vm1754_vm15, %v1752_v39, %v1689_v9 }
0x1430   :  { %1705 = vrot.lane.b32.xlu0 %v3643_v13, %s2985_s24  ;;  %v1698_v13 = vpop.permute.xlu1 %1697 }
0x1434   :  { %1711 = vrot.lane.b32.xlu0 %v3482_v30, %s2986_s27  ;;  %v2370_v30 = vmul.f32 %v2368_v49, %v3722_v8  ;;  %v1704_v48 = vpop.permute.xlu1 %1703 }
0x1438   :  { %1717 = vrot.lane.b32.xlu0 %v3490_v54, %s2987_s28  ;;  %v1710_v14 = vpop.permute.xlu1 %1709 }
0x143c   :  { %1723 = vrot.lane.b32.xlu0 %v3623_v55, %s2988_s29  ;;  %v1716_v11 = vpop.permute.xlu1 %1715 }
0x1440   :  { %1732 = vrot.lane.b32.xlu0 %v1728_v35, %s2965_s25  ;;  %s2990_s25 = smov 14   ;;  %v1722_v59 = vpop.permute.xlu1 %1721 }
0x1444   :  { %1739 = vrot.lane.b32.xlu0 %v1738_v57, %s2989_s2  ;;  %v1731_v23 = vpop.permute.xlu1 %1730 }
0x1448   :  { %v2379_v44 = vpop.permute.xlu1 %2378 }
0x1449   :  { %v2385_v3 = vsel %vm1984_vm12, %v3696_v27, %v2379_v44 }
0x144c   :  { %v1742_v1 = vpop.permute.xlu1 %1741 }
0x148a   :  { %v2373_v0 = vpop.permute.xlu0 %2372 }
0x148b   :  { %v2375_v16 = vmul.f32 %v3732_v42, %v2373_v0 }
0x148d   :  { %v2376_v55 = vadd.f32 %v2375_v16, %v2370_v30 }
0x148e   :  { %v1670_v5 = vpop.permute.xlu0 %1669 }
0x148f   :  { %2382 = vrot.lane.b32.xlu0 %v2376_v55, %s2990_s25  ;;  %v1747_v12 = vsel %vm1745_vm0, %v3637_v10, %v1670_v5  ;;  %v1758_v10 = vsel %vm1757_vm2, %v1755_v58, %v1698_v13 }
0x1490   :  { %v1761_v17 = vsel %vm1760_vm3, %v1758_v10, %v1704_v48 }
0x1491   :  { %v1764_v51 = vsel %vm1763_vm4, %v1761_v17, %v1710_v14 }
0x1492   :  { %v1676_v54 = vpop.permute.xlu0 %1675  ;;  %v1766_v36 = vsel %vm391_vm9, %v1764_v51, %v1716_v11 }
0x1493   :  { %v1750_v8 = vsel %vm1748_vm1, %v1747_v12, %v1676_v54  ;;  %v1769_v24 = vsel %vm1768_vm5, %v1766_v36, %v1722_v59 }
0x1494   :  { %v1772_v34 = vsel %vm1771_vm7, %v1769_v24, %v1731_v23 }
0x1496   :  { %v1682_v43 = vpop.permute.xlu0 %1681 }
0x1497   :  { %v1753_v25 = vsel %vm1751_vm14, %v1750_v8, %v1682_v43 }
0x149a   :  { %v1691_v20 = vpop.permute.xlu0 %1690 }
0x149b   :  { %v1756_v38 = vsel %vm1754_vm15, %v1753_v25, %v1691_v20 }
0x149e   :  { %v1700_v26 = vpop.permute.xlu0 %1699 }
0x149f   :  { %v1759_v53 = vsel %vm1757_vm2, %v1756_v38, %v1700_v26 }
0x14a2   :  { %v1706_v2 = vpop.permute.xlu0 %1705 }
0x14a3   :  { %v1762_v60 = vsel %vm1760_vm3, %v1759_v53, %v1706_v2 }
0x14a6   :  { %v1712_v6 = vpop.permute.xlu0 %1711 }
0x14a7   :  { %v1765_v29 = vsel %vm1763_vm4, %v1762_v60, %v1712_v6 }
0x14aa   :  { %v1718_v19 = vpop.permute.xlu0 %1717 }
0x14ab   :  { %v1767_v42 = vsel %vm391_vm9, %v1765_v29, %v1718_v19 }
0x14ae   :  { %v1724_v40 = vpop.permute.xlu0 %1723 }
0x14af   :  { %v1770_v46 = vsel %vm1768_vm5, %v1767_v42, %v1724_v40 }
0x14b2   :  { %v1733_v45 = vpop.permute.xlu0 %1732 }
0x14b3   :  { %v1773_v61 = vsel %vm1771_vm7, %v1770_v46, %v1733_v45 }
0x14b4   :  { %v1776_v63 = vsel %vm1774_vm6, %v1773_v61, %v1742_v1 }
0x14b5   :  { %1780 = vst.msk [vmem:[%s3804_s5 + $0x8] sm:$0xf] %vm1779_vm8, %v1776_v63 }
0x14b6   :  { %v1740_v4 = vpop.permute.xlu0 %1739 }
0x14b7   :  { %v1775_v21 = vsel %vm1774_vm6, %v1772_v34, %v1740_v4 }
0x14b8   :  { %1778 = vst.msk [vmem:[%s3804_s5] sm:$0xff] %vm1777_vm10, %v1775_v21 }
0x1501   :  { %v2383_v31 = vpop.permute.xlu0 %2382 }
0x1502   :  { %v2387_v37 = vsel %vm2386_vm11, %v2385_v3, %v2383_v31 }
0x1503   :  { %2389 = vst.msk [vmem:[%s3805_s4] sm:$0xf] %vm2388_vm13, %v2387_v37 }

</bundles_post_ra>
